<compile_context>
chip_gen: v7x
topology: tpu7x:2x2x1
jax: 0.10.0
libtpu: 0.0.40
codegen_flags: <defaults>
</compile_context>

<pallas_src>
import functools

import jax
import jax.numpy as jnp
from jax import lax
from jax.experimental import pallas as pl
from jax.experimental.pallas import tpu as pltpu


def _pick_batch_block(B: int, cap: int = 8) -> int:
    for d in range(min(B, cap), 0, -1):
        if B % d == 0:
            return d
    return 1


def _pick_time_block(T: int, cap: int = 128) -> int:
    if T <= cap:
        return T
    for d in range(cap - cap % 8, 7, -8):   # multiple-of-8 divisors only
        if T % d == 0:
            return d
    return T                                # fall back: full T resident


def _worm_kernel(x0_ref, e10_ref, e20_ref, alpha_ref, beta_ref, gamma_ref,
                 X_ref, E1_ref, E2_ref, theta_c_ref, x_c_ref, *, dt, n_seg):
    """Blocks (bb batch elements, tt timesteps per grid step):
         x0/e10/e20 : (bb, 3, Np1)
         alpha/beta : (bb, tt, Np1)    gamma : (bb, tt, N)
         X/E1/E2    : (bb, tt, 3*Np1)  (channel-flattened, lane-dense)
       scratch carries across T blocks:
         theta_c_ref: (bb, 1, Np1)     x_c_ref: (bb, 1, 3*Np1)."""
    bb, tt, _ = alpha_ref.shape
    np1 = n_seg + 1
    t_idx = pl.program_id(1)

    @pl.when(t_idx == 0)
    def _init():
        theta_c_ref[...] = jnp.zeros_like(theta_c_ref)
        x0 = x0_ref[...]                                    # (bb, 3, Np1)
        x_c_ref[...] = jnp.concatenate(
            [x0[:, 0:1, :], x0[:, 1:2, :], x0[:, 2:3, :]], axis=-1)

    # Lower-triangular ones matrix: inclusive prefix-sum operator for this
    # T block, applied on the MXU.
    row = lax.broadcasted_iota(jnp.int32, (tt, tt), 0)
    col = lax.broadcasted_iota(jnp.int32, (tt, tt), 1)
    L = (row >= col).astype(jnp.float32)                    # (tt, tt)

    for i in range(bb):                                     # static unroll
        a = alpha_ref[i]                                    # (tt, Np1)
        b = beta_ref[i]                                     # (tt, Np1)
        g = gamma_ref[i]                                    # (tt, N)
        # pad gamma to Np1 body points by repeating the last segment value
        g = jnp.concatenate([g, g[:, n_seg - 1:n_seg]], axis=-1)

        # cumulative twist angle, inclusive / exclusive of the current step
        theta_i = theta_c_ref[i] + dt * jnp.dot(
            L, g, preferred_element_type=jnp.float32)       # (tt, Np1)
        theta_e = theta_i - dt * g

        ci, si = jnp.cos(theta_i), jnp.sin(theta_i)
        ce, se = jnp.cos(theta_e), jnp.sin(theta_e)

        e10 = e10_ref[i]                                    # (3, Np1)
        e20 = e20_ref[i]

        e1_out, e2_out, integrand = [], [], []
        for c in range(3):
            e10c = e10[c:c + 1, :]                          # (1, Np1)
            e20c = e20[c:c + 1, :]
            # frame AFTER step t (module output)
            e1_out.append(ci * e10c + si * e20c)
            e2_out.append(ci * e20c - si * e10c)
            # frame USED at step t (frame after step t-1)
            e1u = ce * e10c + se * e20c
            e2u = ce * e20c - se * e10c
            integrand.append(a * e1u + b * e2u)

        E1 = jnp.concatenate(e1_out, axis=-1)               # (tt, 3*Np1)
        E2 = jnp.concatenate(e2_out, axis=-1)
        integ = jnp.concatenate(integrand, axis=-1)

        X = x_c_ref[i] + dt * jnp.dot(
            L, integ, preferred_element_type=jnp.float32)   # (tt, 3*Np1)

        X_ref[i] = X
        E1_ref[i] = E1
        E2_ref[i] = E2

        # carries for the next T block
        theta_c_ref[i] = theta_i[tt - 1:tt, :]
        x_c_ref[i] = X[tt - 1:tt, :]


def worm_forward(x0, e10, e20, alpha, beta, gamma, *, dt):
    """Batched forward: returns (X, E1, E2), each (B, T, 3, N+1) float32."""
    B, three, np1 = x0.shape
    T = alpha.shape[1]
    n_seg = gamma.shape[2]
    assert three == 3 and np1 == n_seg + 1

    x0 = x0.astype(jnp.float32)
    e10 = e10.astype(jnp.float32)
    e20 = e20.astype(jnp.float32)
    alpha = alpha.astype(jnp.float32)
    beta = beta.astype(jnp.float32)
    gamma = gamma.astype(jnp.float32)

    bb = _pick_batch_block(B)
    tt = _pick_time_block(T)

    kernel = functools.partial(_worm_kernel, dt=float(dt), n_seg=n_seg)

    vec_spec = pl.BlockSpec((bb, 3, np1), lambda b, t: (b, 0, 0))
    ab_spec = pl.BlockSpec((bb, tt, np1), lambda b, t: (b, t, 0))
    g_spec = pl.BlockSpec((bb, tt, n_seg), lambda b, t: (b, t, 0))
    out_spec = pl.BlockSpec((bb, tt, 3 * np1), lambda b, t: (b, t, 0))

    out_shape = tuple(jax.ShapeDtypeStruct((B, T, 3 * np1), jnp.float32)
                      for _ in range(3))

    Xf, E1f, E2f = pl.pallas_call(
        kernel,
        out_shape=out_shape,
        grid=(B // bb, T // tt),
        in_specs=[vec_spec, vec_spec, vec_spec, ab_spec, ab_spec, g_spec],
        out_specs=[out_spec, out_spec, out_spec],
        scratch_shapes=[pltpu.VMEM((bb, 1, np1), jnp.float32),
                        pltpu.VMEM((bb, 1, 3 * np1), jnp.float32)],
        compiler_params=pltpu.CompilerParams(
            dimension_semantics=("parallel", "arbitrary")),
    )(x0, e10, e20, alpha, beta, gamma)

    # free metadata reshape back to the module's (B, T, 3, N+1) layout
    shape = (B, T, 3, np1)
    return Xf.reshape(shape), E1f.reshape(shape), E2f.reshape(shape)


def _reference(x0, e10, e20, alpha, beta, gamma, dt):
    """Pure-JAX closed-form reference of the same surrogate dynamics."""
    gamma_p = jnp.concatenate([gamma, gamma[..., -1:]], axis=-1)   # (B,T,Np1)
    theta_i = dt * jnp.cumsum(gamma_p, axis=1)
    theta_e = theta_i - dt * gamma_p

    def frame(theta):
        c = jnp.cos(theta)[:, :, None, :]
        s = jnp.sin(theta)[:, :, None, :]
        return (c * e10[:, None] + s * e20[:, None],
                c * e20[:, None] - s * e10[:, None])

    E1, E2 = frame(theta_i)
    E1u, E2u = frame(theta_e)
    integ = alpha[:, :, None, :] * E1u + beta[:, :, None, :] * E2u
    X = x0[:, None] + dt * jnp.cumsum(integ, axis=1)
    return X, E1, E2


class WormModulePallas:
    """Mirror of WormModule (forward-only, default flags)."""

    def __init__(self, N: int, dt: float, batch_size: int):
        self.N = N
        self.dt = dt
        self.batch_size = batch_size

    def __call__(self, x0, e10, e20, alpha, beta, gamma):
        return worm_forward(x0, e10, e20, alpha, beta, gamma, dt=self.dt)


if __name__ == "__main__":
    # small shapes consistent with the module: N body segments, T timesteps
    B = 2          # batch_size
    N = 16         # number of segments -> N+1 body points
    T = 8          # number of control timesteps
    dt = 0.01

    Np1 = N + 1
    key = jax.random.PRNGKey(0)
    k1, k2, k3, k4 = jax.random.split(key, 4)

    # straight worm along x, canonical frame, plus small deterministic noise
    s = jnp.linspace(0.0, 1.0, Np1, dtype=jnp.float32)
    x0 = jnp.stack([s, jnp.zeros_like(s), jnp.zeros_like(s)], axis=0)   # (3, Np1)
    x0 = jnp.broadcast_to(x0, (B, 3, Np1)).astype(jnp.float32)
    x0 = x0 + 0.01 * jax.random.normal(k1, (B, 3, Np1), dtype=jnp.float32)

    e10 = jnp.broadcast_to(jnp.array([0.0, 1.0, 0.0], jnp.float32)[:, None],
                           (3, Np1))
    e10 = jnp.broadcast_to(e10, (B, 3, Np1)).astype(jnp.float32)
    e20 = jnp.broadcast_to(jnp.array([0.0, 0.0, 1.0], jnp.float32)[:, None],
                           (3, Np1))
    e20 = jnp.broadcast_to(e20, (B, 3, Np1)).astype(jnp.float32)

    alpha = 0.5 * jax.random.normal(k2, (B, T, Np1), dtype=jnp.float32)
    beta = 0.5 * jax.random.normal(k3, (B, T, Np1), dtype=jnp.float32)
    gamma = 0.1 * jax.random.normal(k4, (B, T, N), dtype=jnp.float32)

    worm = WormModulePallas(N=N, dt=dt, batch_size=B)
    X, E1, E2 = worm(x0, e10, e20, alpha, beta, gamma)
    jax.block_until_ready((X, E1, E2))

    assert X.shape == (B, T, 3, Np1)
    assert E1.shape == (B, T, 3, Np1)
    assert E2.shape == (B, T, 3, Np1)
    assert X.dtype == jnp.float32

    # cross-check against the pure-JAX closed form of the same surrogate
    Xr, E1r, E2r = _reference(x0, e10, e20, alpha, beta, gamma, dt)
    assert bool(jnp.all(jnp.isfinite(X)))
    assert float(jnp.max(jnp.abs(X - Xr))) < 1e-4
    assert float(jnp.max(jnp.abs(E1 - E1r))) < 1e-4
    assert float(jnp.max(jnp.abs(E2 - E2r))) < 1e-4

    print("KERNEL_OK")
</pallas_src>

<mosaic_0001>
module attributes {stable_mosaic.version = 11 : i64} {
  func.func @_worm_kernel(%arg0: i32, %arg1: i32, %arg2: memref<2x3x17xf32, #tpu.memory_space<vmem>>, %arg3: memref<2x3x17xf32, #tpu.memory_space<vmem>>, %arg4: memref<2x3x17xf32, #tpu.memory_space<vmem>>, %arg5: memref<2x8x17xf32, #tpu.memory_space<vmem>>, %arg6: memref<2x8x17xf32, #tpu.memory_space<vmem>>, %arg7: memref<2x8x16xf32, #tpu.memory_space<vmem>>, %arg8: memref<2x8x51xf32, #tpu.memory_space<vmem>>, %arg9: memref<2x8x51xf32, #tpu.memory_space<vmem>>, %arg10: memref<2x8x51xf32, #tpu.memory_space<vmem>>, %arg11: memref<2x1x17xf32, #tpu.memory_space<vmem>>, %arg12: memref<2x1x51xf32, #tpu.memory_space<vmem>>) attributes {dimension_semantics = [#tpu.dimension_semantics<parallel>, #tpu.dimension_semantics<arbitrary>], iteration_bounds = array<i64: 1, 1>, scalar_prefetch = 0 : i64, scratch_operands = 2 : i64, tpu.core_type = #tpu.core_type<tc>, window_params = [{transform_indices = @transform_0, window_bounds = array<i64: 2, 3, 17>}, {transform_indices = @transform_1, window_bounds = array<i64: 2, 3, 17>}, {transform_indices = @transform_2, window_bounds = array<i64: 2, 3, 17>}, {transform_indices = @transform_3, window_bounds = array<i64: 2, 8, 17>}, {transform_indices = @transform_4, window_bounds = array<i64: 2, 8, 17>}, {transform_indices = @transform_5, window_bounds = array<i64: 2, 8, 16>}, {transform_indices = @transform_6, window_bounds = array<i64: 2, 8, 51>}, {transform_indices = @transform_7, window_bounds = array<i64: 2, 8, 51>}, {transform_indices = @transform_8, window_bounds = array<i64: 2, 8, 51>}]} {
    %c0_i32 = arith.constant 0 : i32
    %0 = arith.cmpi eq, %arg1, %c0_i32 : i32
    %1 = arith.extui %0 : i1 to i32
    %c0_i32_0 = arith.constant 0 : i32
    %2 = arith.cmpi ne, %1, %c0_i32_0 : i32
    scf.if %2 {
      %cst_80 = arith.constant 0.000000e+00 : f32
      %264 = vector.broadcast %cst_80 : f32 to vector<2x1x17xf32>
      %c0_81 = arith.constant 0 : index
      %c0_82 = arith.constant 0 : index
      %c0_83 = arith.constant 0 : index
      %265 = vector.load %arg11[%c0_81, %c0_82, %c0_83] : memref<2x1x17xf32, #tpu.memory_space<vmem>>, vector<2x1x17xf32>
      tpu.vector_store %arg11[%c0_81, %c0_82, %c0_83], %264 {strides = array<i32>} : memref<2x1x17xf32, #tpu.memory_space<vmem>>, vector<2x1x17xf32>,
      %c0_84 = arith.constant 0 : index
      %c0_85 = arith.constant 0 : index
      %c0_86 = arith.constant 0 : index
      %266 = vector.load %arg2[%c0_84, %c0_85, %c0_86] : memref<2x3x17xf32, #tpu.memory_space<vmem>>, vector<2x3x17xf32>
      %267 = vector.extract_strided_slice %266 {offsets = [0, 0, 0], sizes = [2, 1, 17], strides = [1, 1, 1]} : vector<2x3x17xf32> to vector<2x1x17xf32>
      %268 = vector.extract_strided_slice %266 {offsets = [0, 1, 0], sizes = [2, 1, 17], strides = [1, 1, 1]} : vector<2x3x17xf32> to vector<2x1x17xf32>
      %269 = vector.extract_strided_slice %266 {offsets = [0, 2, 0], sizes = [2, 1, 17], strides = [1, 1, 1]} : vector<2x3x17xf32> to vector<2x1x17xf32>
      %270 = tpu.concatenate %267, %268, %269 in 2 : vector<2x1x17xf32>, vector<2x1x17xf32>, vector<2x1x17xf32> -> vector<2x1x51xf32>
      %c0_87 = arith.constant 0 : index
      %c0_88 = arith.constant 0 : index
      %c0_89 = arith.constant 0 : index
      %271 = vector.load %arg12[%c0_87, %c0_88, %c0_89] : memref<2x1x51xf32, #tpu.memory_space<vmem>>, vector<2x1x51xf32>
      tpu.vector_store %arg12[%c0_87, %c0_88, %c0_89], %270 {strides = array<i32>} : memref<2x1x51xf32, #tpu.memory_space<vmem>>, vector<2x1x51xf32>,
    } else {
    }
    %3 = tpu.iota {dimensions = array<i32: 0>} : vector<8x8xi32>
    %4 = tpu.iota {dimensions = array<i32: 1>} : vector<8x8xi32>
    %5 = arith.cmpi sge, %3, %4 : vector<8x8xi32>
    %6 = arith.extui %5 : vector<8x8xi1> to vector<8x8xi32>
    %7 = arith.sitofp %6 : vector<8x8xi32> to vector<8x8xf32>
    %c0 = arith.constant 0 : index
    %c0_1 = arith.constant 0 : index
    %c0_2 = arith.constant 0 : index
    %8 = vector.load %arg5[%c0, %c0_1, %c0_2] : memref<2x8x17xf32, #tpu.memory_space<vmem>>, vector<1x8x17xf32>
    %9 = vector.shape_cast %8 : vector<1x8x17xf32> to vector<8x17xf32>
    %c0_3 = arith.constant 0 : index
    %c0_4 = arith.constant 0 : index
    %c0_5 = arith.constant 0 : index
    %10 = vector.load %arg6[%c0_3, %c0_4, %c0_5] : memref<2x8x17xf32, #tpu.memory_space<vmem>>, vector<1x8x17xf32>
    %11 = vector.shape_cast %10 : vector<1x8x17xf32> to vector<8x17xf32>
    %c0_6 = arith.constant 0 : index
    %c0_7 = arith.constant 0 : index
    %c0_8 = arith.constant 0 : index
    %12 = vector.load %arg7[%c0_6, %c0_7, %c0_8] : memref<2x8x16xf32, #tpu.memory_space<vmem>>, vector<1x8x16xf32>
    %13 = vector.shape_cast %12 : vector<1x8x16xf32> to vector<8x16xf32>
    %14 = vector.extract_strided_slice %13 {offsets = [0, 15], sizes = [8, 1], strides = [1, 1]} : vector<8x16xf32> to vector<8x1xf32>
    %15 = tpu.concatenate %13, %14 in 1 : vector<8x16xf32>, vector<8x1xf32> -> vector<8x17xf32>
    %c0_9 = arith.constant 0 : index
    %c0_10 = arith.constant 0 : index
    %c0_11 = arith.constant 0 : index
    %16 = vector.load %arg11[%c0_9, %c0_10, %c0_11] : memref<2x1x17xf32, #tpu.memory_space<vmem>>, vector<1x1x17xf32>
    %17 = vector.shape_cast %16 : vector<1x1x17xf32> to vector<1x17xf32>
    %cst = arith.constant dense<0.000000e+00> : vector<8x17xf32>
    %18 = tpu.matmul %7, %15, %cst {dimension_numbers = #tpu.dot_dimension_numbers<[1], [0], [0], [1], [0, 0, 1, 1], [], []>} : vector<8x8xf32>, vector<8x17xf32>, vector<8x17xf32> -> vector<8x17xf32>
    %cst_12 = arith.constant 0.00999999977 : f32
    %19 = vector.broadcast %cst_12 : f32 to vector<8x17xf32>
    %20 = arith.mulf %19, %18 : vector<8x17xf32>
    %21 = vector.broadcast %17 : vector<1x17xf32> to vector<8x17xf32>
    %22 = arith.addf %21, %20 : vector<8x17xf32>
    %cst_13 = arith.constant 0.00999999977 : f32
    %23 = vector.broadcast %cst_13 : f32 to vector<8x17xf32>
    %24 = arith.mulf %23, %15 : vector<8x17xf32>
    %25 = arith.subf %22, %24 : vector<8x17xf32>
    %26 = math.cos %22 : vector<8x17xf32>
    %27 = math.sin %22 : vector<8x17xf32>
    %28 = math.cos %25 : vector<8x17xf32>
    %29 = math.sin %25 : vector<8x17xf32>
    %c0_14 = arith.constant 0 : index
    %c0_15 = arith.constant 0 : index
    %c0_16 = arith.constant 0 : index
    %30 = vector.load %arg3[%c0_14, %c0_15, %c0_16] : memref<2x3x17xf32, #tpu.memory_space<vmem>>, vector<1x3x17xf32>
    %31 = vector.shape_cast %30 : vector<1x3x17xf32> to vector<3x17xf32>
    %c0_17 = arith.constant 0 : index
    %c0_18 = arith.constant 0 : index
    %c0_19 = arith.constant 0 : index
    %32 = vector.load %arg4[%c0_17, %c0_18, %c0_19] : memref<2x3x17xf32, #tpu.memory_space<vmem>>, vector<1x3x17xf32>
    %33 = vector.shape_cast %32 : vector<1x3x17xf32> to vector<3x17xf32>
    %34 = vector.extract_strided_slice %31 {offsets = [0, 0], sizes = [1, 17], strides = [1, 1]} : vector<3x17xf32> to vector<1x17xf32>
    %35 = vector.extract_strided_slice %33 {offsets = [0, 0], sizes = [1, 17], strides = [1, 1]} : vector<3x17xf32> to vector<1x17xf32>
    %36 = vector.broadcast %34 : vector<1x17xf32> to vector<8x17xf32>
    %37 = arith.mulf %26, %36 : vector<8x17xf32>
    %38 = vector.broadcast %35 : vector<1x17xf32> to vector<8x17xf32>
    %39 = arith.mulf %27, %38 : vector<8x17xf32>
    %40 = arith.addf %37, %39 : vector<8x17xf32>
    %41 = vector.broadcast %35 : vector<1x17xf32> to vector<8x17xf32>
    %42 = arith.mulf %26, %41 : vector<8x17xf32>
    %43 = vector.broadcast %34 : vector<1x17xf32> to vector<8x17xf32>
    %44 = arith.mulf %27, %43 : vector<8x17xf32>
    %45 = arith.subf %42, %44 : vector<8x17xf32>
    %46 = vector.broadcast %34 : vector<1x17xf32> to vector<8x17xf32>
    %47 = arith.mulf %28, %46 : vector<8x17xf32>
    %48 = vector.broadcast %35 : vector<1x17xf32> to vector<8x17xf32>
    %49 = arith.mulf %29, %48 : vector<8x17xf32>
    %50 = arith.addf %47, %49 : vector<8x17xf32>
    %51 = vector.broadcast %35 : vector<1x17xf32> to vector<8x17xf32>
    %52 = arith.mulf %28, %51 : vector<8x17xf32>
    %53 = vector.broadcast %34 : vector<1x17xf32> to vector<8x17xf32>
    %54 = arith.mulf %29, %53 : vector<8x17xf32>
    %55 = arith.subf %52, %54 : vector<8x17xf32>
    %56 = arith.mulf %9, %50 : vector<8x17xf32>
    %57 = arith.mulf %11, %55 : vector<8x17xf32>
    %58 = arith.addf %56, %57 : vector<8x17xf32>
    %59 = vector.extract_strided_slice %31 {offsets = [1, 0], sizes = [1, 17], strides = [1, 1]} : vector<3x17xf32> to vector<1x17xf32>
    %60 = vector.extract_strided_slice %33 {offsets = [1, 0], sizes = [1, 17], strides = [1, 1]} : vector<3x17xf32> to vector<1x17xf32>
    %61 = vector.broadcast %59 : vector<1x17xf32> to vector<8x17xf32>
    %62 = arith.mulf %26, %61 : vector<8x17xf32>
    %63 = vector.broadcast %60 : vector<1x17xf32> to vector<8x17xf32>
    %64 = arith.mulf %27, %63 : vector<8x17xf32>
    %65 = arith.addf %62, %64 : vector<8x17xf32>
    %66 = vector.broadcast %60 : vector<1x17xf32> to vector<8x17xf32>
    %67 = arith.mulf %26, %66 : vector<8x17xf32>
    %68 = vector.broadcast %59 : vector<1x17xf32> to vector<8x17xf32>
    %69 = arith.mulf %27, %68 : vector<8x17xf32>
    %70 = arith.subf %67, %69 : vector<8x17xf32>
    %71 = vector.broadcast %59 : vector<1x17xf32> to vector<8x17xf32>
    %72 = arith.mulf %28, %71 : vector<8x17xf32>
    %73 = vector.broadcast %60 : vector<1x17xf32> to vector<8x17xf32>
    %74 = arith.mulf %29, %73 : vector<8x17xf32>
    %75 = arith.addf %72, %74 : vector<8x17xf32>
    %76 = vector.broadcast %60 : vector<1x17xf32> to vector<8x17xf32>
    %77 = arith.mulf %28, %76 : vector<8x17xf32>
    %78 = vector.broadcast %59 : vector<1x17xf32> to vector<8x17xf32>
    %79 = arith.mulf %29, %78 : vector<8x17xf32>
    %80 = arith.subf %77, %79 : vector<8x17xf32>
    %81 = arith.mulf %9, %75 : vector<8x17xf32>
    %82 = arith.mulf %11, %80 : vector<8x17xf32>
    %83 = arith.addf %81, %82 : vector<8x17xf32>
    %84 = vector.extract_strided_slice %31 {offsets = [2, 0], sizes = [1, 17], strides = [1, 1]} : vector<3x17xf32> to vector<1x17xf32>
    %85 = vector.extract_strided_slice %33 {offsets = [2, 0], sizes = [1, 17], strides = [1, 1]} : vector<3x17xf32> to vector<1x17xf32>
    %86 = vector.broadcast %84 : vector<1x17xf32> to vector<8x17xf32>
    %87 = arith.mulf %26, %86 : vector<8x17xf32>
    %88 = vector.broadcast %85 : vector<1x17xf32> to vector<8x17xf32>
    %89 = arith.mulf %27, %88 : vector<8x17xf32>
    %90 = arith.addf %87, %89 : vector<8x17xf32>
    %91 = vector.broadcast %85 : vector<1x17xf32> to vector<8x17xf32>
    %92 = arith.mulf %26, %91 : vector<8x17xf32>
    %93 = vector.broadcast %84 : vector<1x17xf32> to vector<8x17xf32>
    %94 = arith.mulf %27, %93 : vector<8x17xf32>
    %95 = arith.subf %92, %94 : vector<8x17xf32>
    %96 = vector.broadcast %84 : vector<1x17xf32> to vector<8x17xf32>
    %97 = arith.mulf %28, %96 : vector<8x17xf32>
    %98 = vector.broadcast %85 : vector<1x17xf32> to vector<8x17xf32>
    %99 = arith.mulf %29, %98 : vector<8x17xf32>
    %100 = arith.addf %97, %99 : vector<8x17xf32>
    %101 = vector.broadcast %85 : vector<1x17xf32> to vector<8x17xf32>
    %102 = arith.mulf %28, %101 : vector<8x17xf32>
    %103 = vector.broadcast %84 : vector<1x17xf32> to vector<8x17xf32>
    %104 = arith.mulf %29, %103 : vector<8x17xf32>
    %105 = arith.subf %102, %104 : vector<8x17xf32>
    %106 = arith.mulf %9, %100 : vector<8x17xf32>
    %107 = arith.mulf %11, %105 : vector<8x17xf32>
    %108 = arith.addf %106, %107 : vector<8x17xf32>
    %109 = tpu.concatenate %40, %65, %90 in 1 : vector<8x17xf32>, vector<8x17xf32>, vector<8x17xf32> -> vector<8x51xf32>
    %110 = tpu.concatenate %45, %70, %95 in 1 : vector<8x17xf32>, vector<8x17xf32>, vector<8x17xf32> -> vector<8x51xf32>
    %111 = tpu.concatenate %58, %83, %108 in 1 : vector<8x17xf32>, vector<8x17xf32>, vector<8x17xf32> -> vector<8x51xf32>
    %c0_20 = arith.constant 0 : index
    %c0_21 = arith.constant 0 : index
    %c0_22 = arith.constant 0 : index
    %112 = vector.load %arg12[%c0_20, %c0_21, %c0_22] : memref<2x1x51xf32, #tpu.memory_space<vmem>>, vector<1x1x51xf32>
    %113 = vector.shape_cast %112 : vector<1x1x51xf32> to vector<1x51xf32>
    %cst_23 = arith.constant dense<0.000000e+00> : vector<8x51xf32>
    %114 = tpu.matmul %7, %111, %cst_23 {dimension_numbers = #tpu.dot_dimension_numbers<[1], [0], [0], [1], [0, 0, 1, 1], [], []>} : vector<8x8xf32>, vector<8x51xf32>, vector<8x51xf32> -> vector<8x51xf32>
    %cst_24 = arith.constant 0.00999999977 : f32
    %115 = vector.broadcast %cst_24 : f32 to vector<8x51xf32>
    %116 = arith.mulf %115, %114 : vector<8x51xf32>
    %117 = vector.broadcast %113 : vector<1x51xf32> to vector<8x51xf32>
    %118 = arith.addf %117, %116 : vector<8x51xf32>
    %c0_25 = arith.constant 0 : index
    %c0_26 = arith.constant 0 : index
    %c0_27 = arith.constant 0 : index
    %119 = vector.load %arg8[%c0_25, %c0_26, %c0_27] : memref<2x8x51xf32, #tpu.memory_space<vmem>>, vector<1x8x51xf32>
    %120 = vector.shape_cast %119 : vector<1x8x51xf32> to vector<8x51xf32>
    %121 = vector.shape_cast %118 : vector<8x51xf32> to vector<1x8x51xf32>
    tpu.vector_store %arg8[%c0_25, %c0_26, %c0_27], %121 {strides = array<i32>} : memref<2x8x51xf32, #tpu.memory_space<vmem>>, vector<1x8x51xf32>,
    %c0_28 = arith.constant 0 : index
    %c0_29 = arith.constant 0 : index
    %c0_30 = arith.constant 0 : index
    %122 = vector.load %arg9[%c0_28, %c0_29, %c0_30] : memref<2x8x51xf32, #tpu.memory_space<vmem>>, vector<1x8x51xf32>
    %123 = vector.shape_cast %122 : vector<1x8x51xf32> to vector<8x51xf32>
    %124 = vector.shape_cast %109 : vector<8x51xf32> to vector<1x8x51xf32>
    tpu.vector_store %arg9[%c0_28, %c0_29, %c0_30], %124 {strides = array<i32>} : memref<2x8x51xf32, #tpu.memory_space<vmem>>, vector<1x8x51xf32>,
    %c0_31 = arith.constant 0 : index
    %c0_32 = arith.constant 0 : index
    %c0_33 = arith.constant 0 : index
    %125 = vector.load %arg10[%c0_31, %c0_32, %c0_33] : memref<2x8x51xf32, #tpu.memory_space<vmem>>, vector<1x8x51xf32>
    %126 = vector.shape_cast %125 : vector<1x8x51xf32> to vector<8x51xf32>
    %127 = vector.shape_cast %110 : vector<8x51xf32> to vector<1x8x51xf32>
    tpu.vector_store %arg10[%c0_31, %c0_32, %c0_33], %127 {strides = array<i32>} : memref<2x8x51xf32, #tpu.memory_space<vmem>>, vector<1x8x51xf32>,
    %128 = vector.extract_strided_slice %22 {offsets = [7, 0], sizes = [1, 17], strides = [1, 1]} : vector<8x17xf32> to vector<1x17xf32>
    %c0_34 = arith.constant 0 : index
    %c0_35 = arith.constant 0 : index
    %c0_36 = arith.constant 0 : index
    %129 = vector.load %arg11[%c0_34, %c0_35, %c0_36] : memref<2x1x17xf32, #tpu.memory_space<vmem>>, vector<1x1x17xf32>
    %130 = vector.shape_cast %129 : vector<1x1x17xf32> to vector<1x17xf32>
    %131 = vector.shape_cast %128 : vector<1x17xf32> to vector<1x1x17xf32>
    tpu.vector_store %arg11[%c0_34, %c0_35, %c0_36], %131 {strides = array<i32>} : memref<2x1x17xf32, #tpu.memory_space<vmem>>, vector<1x1x17xf32>,
    %132 = vector.extract_strided_slice %118 {offsets = [7, 0], sizes = [1, 51], strides = [1, 1]} : vector<8x51xf32> to vector<1x51xf32>
    %c0_37 = arith.constant 0 : index
    %c0_38 = arith.constant 0 : index
    %c0_39 = arith.constant 0 : index
    %133 = vector.load %arg12[%c0_37, %c0_38, %c0_39] : memref<2x1x51xf32, #tpu.memory_space<vmem>>, vector<1x1x51xf32>
    %134 = vector.shape_cast %133 : vector<1x1x51xf32> to vector<1x51xf32>
    %135 = vector.shape_cast %132 : vector<1x51xf32> to vector<1x1x51xf32>
    tpu.vector_store %arg12[%c0_37, %c0_38, %c0_39], %135 {strides = array<i32>} : memref<2x1x51xf32, #tpu.memory_space<vmem>>, vector<1x1x51xf32>,
    %c1 = arith.constant 1 : index
    %c0_40 = arith.constant 0 : index
    %c0_41 = arith.constant 0 : index
    %136 = vector.load %arg5[%c1, %c0_40, %c0_41] : memref<2x8x17xf32, #tpu.memory_space<vmem>>, vector<1x8x17xf32>
    %137 = vector.shape_cast %136 : vector<1x8x17xf32> to vector<8x17xf32>
    %c1_42 = arith.constant 1 : index
    %c0_43 = arith.constant 0 : index
    %c0_44 = arith.constant 0 : index
    %138 = vector.load %arg6[%c1_42, %c0_43, %c0_44] : memref<2x8x17xf32, #tpu.memory_space<vmem>>, vector<1x8x17xf32>
    %139 = vector.shape_cast %138 : vector<1x8x17xf32> to vector<8x17xf32>
    %c1_45 = arith.constant 1 : index
    %c0_46 = arith.constant 0 : index
    %c0_47 = arith.constant 0 : index
    %140 = vector.load %arg7[%c1_45, %c0_46, %c0_47] : memref<2x8x16xf32, #tpu.memory_space<vmem>>, vector<1x8x16xf32>
    %141 = vector.shape_cast %140 : vector<1x8x16xf32> to vector<8x16xf32>
    %142 = vector.extract_strided_slice %141 {offsets = [0, 15], sizes = [8, 1], strides = [1, 1]} : vector<8x16xf32> to vector<8x1xf32>
    %143 = tpu.concatenate %141, %142 in 1 : vector<8x16xf32>, vector<8x1xf32> -> vector<8x17xf32>
    %c1_48 = arith.constant 1 : index
    %c0_49 = arith.constant 0 : index
    %c0_50 = arith.constant 0 : index
    %144 = vector.load %arg11[%c1_48, %c0_49, %c0_50] : memref<2x1x17xf32, #tpu.memory_space<vmem>>, vector<1x1x17xf32>
    %145 = vector.shape_cast %144 : vector<1x1x17xf32> to vector<1x17xf32>
    %cst_51 = arith.constant dense<0.000000e+00> : vector<8x17xf32>
    %146 = tpu.matmul %7, %143, %cst_51 {dimension_numbers = #tpu.dot_dimension_numbers<[1], [0], [0], [1], [0, 0, 1, 1], [], []>} : vector<8x8xf32>, vector<8x17xf32>, vector<8x17xf32> -> vector<8x17xf32>
    %cst_52 = arith.constant 0.00999999977 : f32
    %147 = vector.broadcast %cst_52 : f32 to vector<8x17xf32>
    %148 = arith.mulf %147, %146 : vector<8x17xf32>
    %149 = vector.broadcast %145 : vector<1x17xf32> to vector<8x17xf32>
    %150 = arith.addf %149, %148 : vector<8x17xf32>
    %cst_53 = arith.constant 0.00999999977 : f32
    %151 = vector.broadcast %cst_53 : f32 to vector<8x17xf32>
    %152 = arith.mulf %151, %143 : vector<8x17xf32>
    %153 = arith.subf %150, %152 : vector<8x17xf32>
    %154 = math.cos %150 : vector<8x17xf32>
    %155 = math.sin %150 : vector<8x17xf32>
    %156 = math.cos %153 : vector<8x17xf32>
    %157 = math.sin %153 : vector<8x17xf32>
    %c1_54 = arith.constant 1 : index
    %c0_55 = arith.constant 0 : index
    %c0_56 = arith.constant 0 : index
    %158 = vector.load %arg3[%c1_54, %c0_55, %c0_56] : memref<2x3x17xf32, #tpu.memory_space<vmem>>, vector<1x3x17xf32>
    %159 = vector.shape_cast %158 : vector<1x3x17xf32> to vector<3x17xf32>
    %c1_57 = arith.constant 1 : index
    %c0_58 = arith.constant 0 : index
    %c0_59 = arith.constant 0 : index
    %160 = vector.load %arg4[%c1_57, %c0_58, %c0_59] : memref<2x3x17xf32, #tpu.memory_space<vmem>>, vector<1x3x17xf32>
    %161 = vector.shape_cast %160 : vector<1x3x17xf32> to vector<3x17xf32>
    %162 = vector.extract_strided_slice %159 {offsets = [0, 0], sizes = [1, 17], strides = [1, 1]} : vector<3x17xf32> to vector<1x17xf32>
    %163 = vector.extract_strided_slice %161 {offsets = [0, 0], sizes = [1, 17], strides = [1, 1]} : vector<3x17xf32> to vector<1x17xf32>
    %164 = vector.broadcast %162 : vector<1x17xf32> to vector<8x17xf32>
    %165 = arith.mulf %154, %164 : vector<8x17xf32>
    %166 = vector.broadcast %163 : vector<1x17xf32> to vector<8x17xf32>
    %167 = arith.mulf %155, %166 : vector<8x17xf32>
    %168 = arith.addf %165, %167 : vector<8x17xf32>
    %169 = vector.broadcast %163 : vector<1x17xf32> to vector<8x17xf32>
    %170 = arith.mulf %154, %169 : vector<8x17xf32>
    %171 = vector.broadcast %162 : vector<1x17xf32> to vector<8x17xf32>
    %172 = arith.mulf %155, %171 : vector<8x17xf32>
    %173 = arith.subf %170, %172 : vector<8x17xf32>
    %174 = vector.broadcast %162 : vector<1x17xf32> to vector<8x17xf32>
    %175 = arith.mulf %156, %174 : vector<8x17xf32>
    %176 = vector.broadcast %163 : vector<1x17xf32> to vector<8x17xf32>
    %177 = arith.mulf %157, %176 : vector<8x17xf32>
    %178 = arith.addf %175, %177 : vector<8x17xf32>
    %179 = vector.broadcast %163 : vector<1x17xf32> to vector<8x17xf32>
    %180 = arith.mulf %156, %179 : vector<8x17xf32>
    %181 = vector.broadcast %162 : vector<1x17xf32> to vector<8x17xf32>
    %182 = arith.mulf %157, %181 : vector<8x17xf32>
    %183 = arith.subf %180, %182 : vector<8x17xf32>
    %184 = arith.mulf %137, %178 : vector<8x17xf32>
    %185 = arith.mulf %139, %183 : vector<8x17xf32>
    %186 = arith.addf %184, %185 : vector<8x17xf32>
    %187 = vector.extract_strided_slice %159 {offsets = [1, 0], sizes = [1, 17], strides = [1, 1]} : vector<3x17xf32> to vector<1x17xf32>
    %188 = vector.extract_strided_slice %161 {offsets = [1, 0], sizes = [1, 17], strides = [1, 1]} : vector<3x17xf32> to vector<1x17xf32>
    %189 = vector.broadcast %187 : vector<1x17xf32> to vector<8x17xf32>
    %190 = arith.mulf %154, %189 : vector<8x17xf32>
    %191 = vector.broadcast %188 : vector<1x17xf32> to vector<8x17xf32>
    %192 = arith.mulf %155, %191 : vector<8x17xf32>
    %193 = arith.addf %190, %192 : vector<8x17xf32>
    %194 = vector.broadcast %188 : vector<1x17xf32> to vector<8x17xf32>
    %195 = arith.mulf %154, %194 : vector<8x17xf32>
    %196 = vector.broadcast %187 : vector<1x17xf32> to vector<8x17xf32>
    %197 = arith.mulf %155, %196 : vector<8x17xf32>
    %198 = arith.subf %195, %197 : vector<8x17xf32>
    %199 = vector.broadcast %187 : vector<1x17xf32> to vector<8x17xf32>
    %200 = arith.mulf %156, %199 : vector<8x17xf32>
    %201 = vector.broadcast %188 : vector<1x17xf32> to vector<8x17xf32>
    %202 = arith.mulf %157, %201 : vector<8x17xf32>
    %203 = arith.addf %200, %202 : vector<8x17xf32>
    %204 = vector.broadcast %188 : vector<1x17xf32> to vector<8x17xf32>
    %205 = arith.mulf %156, %204 : vector<8x17xf32>
    %206 = vector.broadcast %187 : vector<1x17xf32> to vector<8x17xf32>
    %207 = arith.mulf %157, %206 : vector<8x17xf32>
    %208 = arith.subf %205, %207 : vector<8x17xf32>
    %209 = arith.mulf %137, %203 : vector<8x17xf32>
    %210 = arith.mulf %139, %208 : vector<8x17xf32>
    %211 = arith.addf %209, %210 : vector<8x17xf32>
    %212 = vector.extract_strided_slice %159 {offsets = [2, 0], sizes = [1, 17], strides = [1, 1]} : vector<3x17xf32> to vector<1x17xf32>
    %213 = vector.extract_strided_slice %161 {offsets = [2, 0], sizes = [1, 17], strides = [1, 1]} : vector<3x17xf32> to vector<1x17xf32>
    %214 = vector.broadcast %212 : vector<1x17xf32> to vector<8x17xf32>
    %215 = arith.mulf %154, %214 : vector<8x17xf32>
    %216 = vector.broadcast %213 : vector<1x17xf32> to vector<8x17xf32>
    %217 = arith.mulf %155, %216 : vector<8x17xf32>
    %218 = arith.addf %215, %217 : vector<8x17xf32>
    %219 = vector.broadcast %213 : vector<1x17xf32> to vector<8x17xf32>
    %220 = arith.mulf %154, %219 : vector<8x17xf32>
    %221 = vector.broadcast %212 : vector<1x17xf32> to vector<8x17xf32>
    %222 = arith.mulf %155, %221 : vector<8x17xf32>
    %223 = arith.subf %220, %222 : vector<8x17xf32>
    %224 = vector.broadcast %212 : vector<1x17xf32> to vector<8x17xf32>
    %225 = arith.mulf %156, %224 : vector<8x17xf32>
    %226 = vector.broadcast %213 : vector<1x17xf32> to vector<8x17xf32>
    %227 = arith.mulf %157, %226 : vector<8x17xf32>
    %228 = arith.addf %225, %227 : vector<8x17xf32>
    %229 = vector.broadcast %213 : vector<1x17xf32> to vector<8x17xf32>
    %230 = arith.mulf %156, %229 : vector<8x17xf32>
    %231 = vector.broadcast %212 : vector<1x17xf32> to vector<8x17xf32>
    %232 = arith.mulf %157, %231 : vector<8x17xf32>
    %233 = arith.subf %230, %232 : vector<8x17xf32>
    %234 = arith.mulf %137, %228 : vector<8x17xf32>
    %235 = arith.mulf %139, %233 : vector<8x17xf32>
    %236 = arith.addf %234, %235 : vector<8x17xf32>
    %237 = tpu.concatenate %168, %193, %218 in 1 : vector<8x17xf32>, vector<8x17xf32>, vector<8x17xf32> -> vector<8x51xf32>
    %238 = tpu.concatenate %173, %198, %223 in 1 : vector<8x17xf32>, vector<8x17xf32>, vector<8x17xf32> -> vector<8x51xf32>
    %239 = tpu.concatenate %186, %211, %236 in 1 : vector<8x17xf32>, vector<8x17xf32>, vector<8x17xf32> -> vector<8x51xf32>
    %c1_60 = arith.constant 1 : index
    %c0_61 = arith.constant 0 : index
    %c0_62 = arith.constant 0 : index
    %240 = vector.load %arg12[%c1_60, %c0_61, %c0_62] : memref<2x1x51xf32, #tpu.memory_space<vmem>>, vector<1x1x51xf32>
    %241 = vector.shape_cast %240 : vector<1x1x51xf32> to vector<1x51xf32>
    %cst_63 = arith.constant dense<0.000000e+00> : vector<8x51xf32>
    %242 = tpu.matmul %7, %239, %cst_63 {dimension_numbers = #tpu.dot_dimension_numbers<[1], [0], [0], [1], [0, 0, 1, 1], [], []>} : vector<8x8xf32>, vector<8x51xf32>, vector<8x51xf32> -> vector<8x51xf32>
    %cst_64 = arith.constant 0.00999999977 : f32
    %243 = vector.broadcast %cst_64 : f32 to vector<8x51xf32>
    %244 = arith.mulf %243, %242 : vector<8x51xf32>
    %245 = vector.broadcast %241 : vector<1x51xf32> to vector<8x51xf32>
    %246 = arith.addf %245, %244 : vector<8x51xf32>
    %c1_65 = arith.constant 1 : index
    %c0_66 = arith.constant 0 : index
    %c0_67 = arith.constant 0 : index
    %247 = vector.load %arg8[%c1_65, %c0_66, %c0_67] : memref<2x8x51xf32, #tpu.memory_space<vmem>>, vector<1x8x51xf32>
    %248 = vector.shape_cast %247 : vector<1x8x51xf32> to vector<8x51xf32>
    %249 = vector.shape_cast %246 : vector<8x51xf32> to vector<1x8x51xf32>
    tpu.vector_store %arg8[%c1_65, %c0_66, %c0_67], %249 {strides = array<i32>} : memref<2x8x51xf32, #tpu.memory_space<vmem>>, vector<1x8x51xf32>,
    %c1_68 = arith.constant 1 : index
    %c0_69 = arith.constant 0 : index
    %c0_70 = arith.constant 0 : index
    %250 = vector.load %arg9[%c1_68, %c0_69, %c0_70] : memref<2x8x51xf32, #tpu.memory_space<vmem>>, vector<1x8x51xf32>
    %251 = vector.shape_cast %250 : vector<1x8x51xf32> to vector<8x51xf32>
    %252 = vector.shape_cast %237 : vector<8x51xf32> to vector<1x8x51xf32>
    tpu.vector_store %arg9[%c1_68, %c0_69, %c0_70], %252 {strides = array<i32>} : memref<2x8x51xf32, #tpu.memory_space<vmem>>, vector<1x8x51xf32>,
    %c1_71 = arith.constant 1 : index
    %c0_72 = arith.constant 0 : index
    %c0_73 = arith.constant 0 : index
    %253 = vector.load %arg10[%c1_71, %c0_72, %c0_73] : memref<2x8x51xf32, #tpu.memory_space<vmem>>, vector<1x8x51xf32>
    %254 = vector.shape_cast %253 : vector<1x8x51xf32> to vector<8x51xf32>
    %255 = vector.shape_cast %238 : vector<8x51xf32> to vector<1x8x51xf32>
    tpu.vector_store %arg10[%c1_71, %c0_72, %c0_73], %255 {strides = array<i32>} : memref<2x8x51xf32, #tpu.memory_space<vmem>>, vector<1x8x51xf32>,
    %256 = vector.extract_strided_slice %150 {offsets = [7, 0], sizes = [1, 17], strides = [1, 1]} : vector<8x17xf32> to vector<1x17xf32>
    %c1_74 = arith.constant 1 : index
    %c0_75 = arith.constant 0 : index
    %c0_76 = arith.constant 0 : index
    %257 = vector.load %arg11[%c1_74, %c0_75, %c0_76] : memref<2x1x17xf32, #tpu.memory_space<vmem>>, vector<1x1x17xf32>
    %258 = vector.shape_cast %257 : vector<1x1x17xf32> to vector<1x17xf32>
    %259 = vector.shape_cast %256 : vector<1x17xf32> to vector<1x1x17xf32>
    tpu.vector_store %arg11[%c1_74, %c0_75, %c0_76], %259 {strides = array<i32>} : memref<2x1x17xf32, #tpu.memory_space<vmem>>, vector<1x1x17xf32>,
    %260 = vector.extract_strided_slice %246 {offsets = [7, 0], sizes = [1, 51], strides = [1, 1]} : vector<8x51xf32> to vector<1x51xf32>
    %c1_77 = arith.constant 1 : index
    %c0_78 = arith.constant 0 : index
    %c0_79 = arith.constant 0 : index
    %261 = vector.load %arg12[%c1_77, %c0_78, %c0_79] : memref<2x1x51xf32, #tpu.memory_space<vmem>>, vector<1x1x51xf32>
    %262 = vector.shape_cast %261 : vector<1x1x51xf32> to vector<1x51xf32>
    %263 = vector.shape_cast %260 : vector<1x51xf32> to vector<1x1x51xf32>
    tpu.vector_store %arg12[%c1_77, %c0_78, %c0_79], %263 {strides = array<i32>} : memref<2x1x51xf32, #tpu.memory_space<vmem>>, vector<1x1x51xf32>,
    return
  }
  func.func @transform_0(%arg0: i32, %arg1: i32) -> (i32, i32, i32) {
    %c0_i32 = arith.constant 0 : i32
    %c0_i32_0 = arith.constant 0 : i32
    %c0_i32_1 = arith.constant 0 : i32
    return %arg0, %c0_i32, %c0_i32_0 : i32, i32, i32
  }
  func.func @transform_1(%arg0: i32, %arg1: i32) -> (i32, i32, i32) {
    %c0_i32 = arith.constant 0 : i32
    %c0_i32_0 = arith.constant 0 : i32
    %c0_i32_1 = arith.constant 0 : i32
    return %arg0, %c0_i32, %c0_i32_0 : i32, i32, i32
  }
  func.func @transform_2(%arg0: i32, %arg1: i32) -> (i32, i32, i32) {
    %c0_i32 = arith.constant 0 : i32
    %c0_i32_0 = arith.constant 0 : i32
    %c0_i32_1 = arith.constant 0 : i32
    return %arg0, %c0_i32, %c0_i32_0 : i32, i32, i32
  }
  func.func @transform_3(%arg0: i32, %arg1: i32) -> (i32, i32, i32) {
    %c0_i32 = arith.constant 0 : i32
    %c0_i32_0 = arith.constant 0 : i32
    return %arg0, %arg1, %c0_i32 : i32, i32, i32
  }
  func.func @transform_4(%arg0: i32, %arg1: i32) -> (i32, i32, i32) {
    %c0_i32 = arith.constant 0 : i32
    %c0_i32_0 = arith.constant 0 : i32
    return %arg0, %arg1, %c0_i32 : i32, i32, i32
  }
  func.func @transform_5(%arg0: i32, %arg1: i32) -> (i32, i32, i32) {
    %c0_i32 = arith.constant 0 : i32
    %c0_i32_0 = arith.constant 0 : i32
    return %arg0, %arg1, %c0_i32 : i32, i32, i32
  }
  func.func @transform_6(%arg0: i32, %arg1: i32) -> (i32, i32, i32) {
    %c0_i32 = arith.constant 0 : i32
    %c0_i32_0 = arith.constant 0 : i32
    return %arg0, %arg1, %c0_i32 : i32, i32, i32
  }
  func.func @transform_7(%arg0: i32, %arg1: i32) -> (i32, i32, i32) {
    %c0_i32 = arith.constant 0 : i32
    %c0_i32_0 = arith.constant 0 : i32
    return %arg0, %arg1, %c0_i32 : i32, i32, i32
  }
  func.func @transform_8(%arg0: i32, %arg1: i32) -> (i32, i32, i32) {
    %c0_i32 = arith.constant 0 : i32
    %c0_i32_0 = arith.constant 0 : i32
    return %arg0, %arg1, %c0_i32 : i32, i32, i32
  }
}

</mosaic_0001>

<bundles_post_ra>
// kernel: tpu_custom_call.1
= control target key start
LH: loop header
LB: loop body
LE: loop exit
PB: predicated region body
PF: predicated region fallthrough
CT: control target
= control target key end

     0   :  { %14 = vsyncpa [#allocation5], 0  ;;  %s1706_s29 = smov 1   ;;  %v1707_v1 = vmov 0.0   ;;  %vm32_vm0 = vcmask 131072   ;;  %s2463_s0 = inlined_call_operand.vmem [shape: f32[2,3,17], index: 0, kind: input, shape index: {}]   ;;  %s2464_s1 = inlined_call_operand.vmem [shape: f32[2,3,17], index: 1, kind: input, shape index: {}]   ;;  %s2465_s2 = inlined_call_operand.vmem [shape: f32[2,3,17], index: 2, kind: input, shape index: {}]   ;;  %s2466_s3 = inlined_call_operand.vmem [shape: f32[2,8,17], index: 3, kind: input, shape index: {}]   ;;  %s2467_s4 = inlined_call_operand.vmem [shape: f32[2,8,17], index: 4, kind: input, shape index: {}]   ;;  %s2468_s5 = inlined_call_operand.vmem [shape: f32[2,8,16], index: 5, kind: input, shape index: {}]   ;;  %s2469_s6 = inlined_call_operand.hbm [shape: f32[2,8,51], index: 6, kind: output, shape index: {0}]   ;;  %s2470_s7 = inlined_call_operand.hbm [shape: f32[2,8,51], index: 7, kind: output, shape index: {1}]   ;;  %s2471_s8 = inlined_call_operand.hbm [shape: f32[2,8,51], index: 8, kind: output, shape index: {2}]  }
   0x1   :  { %v73_v0 = vld [vmem:[%s2468_s5] sm:$0xff]  ;;  %1568 = vmatprep.subr.mxu0 %v1707_v1 }
   0x2   :  { %75 = vrot.lane.b32.xlu0 %v73_v0, %s1706_s29 }
   0x3   :  { %15 = vsyncpa [#allocation7], 0  ;;  %v1537_v2 = vld [vmem:[%s2468_s5 + $0x8] sm:$0xff]  ;;  %vm1708_vm1 = vmmov 0   ;;  %33 = vst.msk [vmem:[#allocation2] sm:$0x1] %vm32_vm0, %v1707_v1  ;;  %1573 = vmatprep.subr.mxu1 %v1707_v1  ;;  %v64_v3 = vlaneseq }
   0x4   :  { %1570 = vmatprep.mubr.msk.f32.mxu0 %vm1708_vm1, %v1707_v1  ;;  %34 = vst.msk [vmem:[#allocation2 + $0x1] sm:$0x1] %vm32_vm0, %v1707_v1  ;;  %1575 = vmatprep.mubr.msk.f32.mxu1 %vm1708_vm1, %v1707_v1  ;;  %vm78_vm3 = vcmask 130048   ;;  %vm81_vm4 = vcmask 64512   ;;  %v579_v12 = vld [vmem:[%s2464_s1] sm:$0x7] }
   0x5   :  { %v65_v4 = vshrl.u32 %v64_v3, 7  ;;  %v67_v5 = vand.u32 127, %v64_v3  ;;  %v580_v13 = vld [vmem:[%s2465_s2] sm:$0x7]  ;;  %vm765_vm5 = vcmask 138247   ;;  %s1715_s19 = smov 17  }
   0x6   :  { %776 = vrot.lane.b32.xlu0 %v1537_v2, %s1706_s29  ;;  %v1837_v52 = vld [vmem:[%s2464_s1 + $0x4] sm:$0x7]  ;;  %s1716_s24 = smov 34  }
   0x7   :  { %vm68_vm2 = vcmp.ge.s32.totalorder %v65_v4, %v67_v5  ;;  %v1791_v11 = vsub.s32 0, %v65_v4  ;;  %v1824_v42 = vsub.s32 1, %v65_v4  ;;  %v1830_v50 = vsub.s32 2, %v65_v4 }
   0x8   :  { %v1782_v7 = vsel %vm68_vm2, 1.0, %v1707_v1 }
   0x9   :  { %v1800_v14 = vrot.slane %v579_v12, %v1791_v11  ;;  %v1803_v15 = vrot.slane %v580_v13, %v1791_v11  ;;  %v1846_v60 = vrot.slane %v579_v12, %v1824_v42  ;;  %v1849_v61 = vrot.slane %v580_v13, %v1824_v42 }
   0xa   :  { %v1516_v16 = vld [vmem:[#allocation2] ss:$0 sm:$0xff]  ;;  %v1856_v63 = vrot.slane %v1837_v52, %v1824_v42  ;;  %v1866_v5 = vrot.slane %v1837_v52, %v1830_v50 }
   0xb   :  { %v1539_v22 = vld [vmem:[#allocation2 + $0x1] ss:$0 sm:$0xff] }
  0x74   :  { %v76_v6 = vpop.permute.xlu0 %75 }
  0x75   :  { %v79_v8 = vsel %vm78_vm3, %v73_v0, %v76_v6  ;;  %v1859_v0 = vrot.slane %v579_v12, %v1830_v50 }
  0x76   :  { %1569 = vmatpush3.msra.mxu0 %v79_v8  ;;  %v163_v20 = vmul.f32 0.01, %v79_v8 }
  0x77   :  { %1571 = vmatmul.mubr.msk.f32.vlgmr.msra.gmra.mrb[0].mxu0 %vm81_vm4, %v1782_v7  ;;  %1578 = vmatprep.subr.mxu0 %v1707_v1 }
  0x78   :  { %v777_v9 = vpop.permute.xlu0 %776  ;;  %1580 = vmatprep.mubr.msk.f32.mxu0 %vm1708_vm1, %v1707_v1 }
  0x79   :  { %v779_v10 = vsel %vm78_vm3, %v1537_v2, %v777_v9  ;;  %v1862_v2 = vrot.slane %v580_v13, %v1830_v50  ;;  %v1709_v9 = vmov 2102212464   ;;  %v1710_v13 = vmov 920167782  }
  0x7a   :  { %1579 = vmatpush3.msra.mxu0 %v779_v10  ;;  %v860_v28 = vmul.f32 0.01, %v779_v10 }
  0x7b   :  { %1581 = vmatmul.mubr.msk.f32.vlgmr.msra.gmra.mrb[2].mxu0 %vm81_vm4, %v1782_v7 }
 0x14a   :  { %v151_v17 = vpop.f32.mrb[0].mxu0 }
 0x14b   :  { %v155_v18 = vmul.f32 0.01, %v151_v17  ;;  %v1572_v19 = vpop.f32.mrb[1].mxu0 }
 0x14c   :  { %v1711_v19 = vmov 683565275  }
 0x14d   :  { %v1805_v21 = vadd.f32 %v1516_v16, %v155_v18 }
 0x14e   :  { %v848_v23 = vpop.f32.mrb[2].mxu0 }
 0x14f   :  { %v1808_v24 = vsub.f32 %v1805_v21, %v163_v20  ;;  %v168_v25 = vand.u32 2139095040, %v1805_v21  ;;  %766 = vst.msk [vmem:[#allocation2 - $0x7] sm:$0x80] %vm765_vm5, %v1805_v21  ;;  %v852_v26 = vmul.f32 0.01, %v848_v23  ;;  %v1582_v27 = vpop.f32.mrb[3].mxu0 }
 0x150   :  { %v165_v45 = vand.u32 2147483647, %v1805_v21 }
 0x151   :  { %v169_v29 = vshrl.u32 %v168_v25, 23  ;;  %v375_v30 = vand.u32 2139095040, %v1808_v24  ;;  %v1814_v31 = vadd.f32 %v1539_v22, %v852_v26  ;;  %v372_v35 = vand.u32 2147483647, %v1808_v24 }
 0x152   :  { %v1843_v56 = vand.u32 8388607, %v165_v45  ;;  %v1712_v22 = vmov 2475754826  }
 0x153   :  { %v1517_v32 = vadd.s32 4294967169, %v169_v29  ;;  %v376_v33 = vshrl.u32 %v375_v30, 23  ;;  %v1817_v34 = vsub.f32 %v1814_v31, %v860_v28  ;;  %1465 = vst.msk [vmem:[#allocation2 - $0x6] sm:$0x80] %vm765_vm5, %v1814_v31  ;;  %v865_v38 = vand.u32 2139095040, %v1814_v31 }
 0x154   :  { %v379_v47 = vand.u32 8388607, %v372_v35  ;;  %v173_v6 = vor.u32 8388608, %v1843_v56  ;;  %v1713_v28 = vmov 2131351028  }
 0x155   :  { %v175_v36 = vadd.s32 1, %v1517_v32  ;;  %v1525_v37 = vadd.s32 4294967169, %v376_v33  ;;  %v1072_v39 = vand.u32 2139095040, %v1817_v34  ;;  %v1069_v44 = vand.u32 2147483647, %v1817_v34 }
 0x156   :  { %v866_v46 = vshrl.u32 %v865_v38, 23  ;;  %v380_v58 = vor.u32 8388608, %v379_v47  ;;  %v1714_v47 = vmov 1326507024  }
 0x157   :  { %vm176_vm6 = vcmp.gt.s32.totalorder %v175_v36, 0  ;;  %v382_v40 = vadd.s32 1, %v1525_v37  ;;  %v1073_v41 = vshrl.u32 %v1072_v39, 23  ;;  %v1076_v55 = vand.u32 8388607, %v1069_v44 }
 0x158   :  { %v177_v43 = vsel %vm176_vm6, %v175_v36, 0  ;;  %v1540_v57 = vadd.s32 4294967169, %v866_v46  ;;  %v1877_v16 = vshll.u32 %v380_v58, 8 }
 0x159   :  { %vm383_vm7 = vcmp.gt.s32.totalorder %v382_v40, 0  ;;  %v1548_v49 = vadd.s32 4294967169, %v1073_v41  ;;  %v1832_v51 = vand.u32 31, %v177_v43  ;;  %v1077_v4 = vor.u32 8388608, %v1076_v55 }
 0x15a   :  { %v384_v48 = vsel %vm383_vm7, %v382_v40, 0  ;;  %v1869_v8 = vshrl.u32 %v177_v43, 5  ;;  %v1875_v12 = vadd.s32 1, %v1540_v57  ;;  %vm374_vm7 = vcmp.lt.s32.totalorder %v1808_v24, 0 }
 0x15b   :  { %v386_v53 = vand.u32 31, %v384_v48  ;;  %v1079_v54 = vadd.s32 1, %v1548_v49  ;;  %v1852_v62 = vsub.s32 32, %v1832_v51  ;;  %v1873_v10 = vshll.u32 %v1709_v9, %v1832_v51 }
 0x15c   :  { %v1881_v17 = vshll.u32 %v1710_v13, %v1832_v51  ;;  %v385_v18 = vshrl.u32 %v384_v48, 5  ;;  %v1893_v36 = vshll.u32 %v1077_v4, 8  ;;  %vm873_vm13 = vcmp.gt.s32.totalorder %v1875_v12, 0 }
 0x15d   :  { %vm1080_vm8 = vcmp.gt.s32.totalorder %v1079_v54, 0  ;;  %v387_v59 = vsub.s32 32, %v386_v53  ;;  %v389_v20 = vshll.u32 %v1711_v19, %v386_v53  ;;  %v1887_v25 = vshrl.u32 %v1710_v13, %v1852_v62 }
 0x15e   :  { %v1081_v3 = vsel %vm1080_vm8, %v1079_v54, 0  ;;  %v392_v27 = vshll.u32 %v1712_v22, %v386_v53  ;;  %v395_v32 = vshll.u32 %v1713_v28, %v386_v53  ;;  %v398_v39 = vshll.u32 %v1709_v9, %v386_v53 }
 0x15f   :  { %v390_v23 = vshrl.u32 %v1712_v22, %v387_v59  ;;  %v1083_v26 = vand.u32 31, %v1081_v3  ;;  %v393_v29 = vshrl.u32 %v1713_v28, %v387_v59  ;;  %v396_v33 = vshrl.u32 %v1709_v9, %v387_v59 }
 0x160   :  { %v1895_v37 = vshrl.u32 %v1081_v3, 5  ;;  %v399_v40 = vshrl.u32 %v1710_v13, %v387_v59  ;;  %v388_v41 = vshrl.u32 %v1711_v19, %v387_v59  ;;  %v401_v46 = vshll.u32 %v1710_v13, %v386_v53 }
 0x161   :  { %v391_v30 = vor.u32 %v390_v23, %v389_v20  ;;  %v394_v38 = vor.u32 %v393_v29, %v392_v27  ;;  %v397_v43 = vor.u32 %v396_v33, %v395_v32  ;;  %v402_v48 = vshrl.u32 %v1714_v47, %v387_v59 }
 0x162   :  { %v1084_v49 = vsub.s32 32, %v1083_v26  ;;  %v400_v54 = vor.u32 %v399_v40, %v398_v39  ;;  %vm404_vm9 = vcmp.lt.s32.totalorder %v385_v18, 1  ;;  %vm405_vm10 = vcmp.lt.s32.totalorder %v385_v18, 2 }
 0x163   :  { %v403_v55 = vor.u32 %v402_v48, %v401_v46  ;;  %vm407_vm11 = vcmp.lt.s32.totalorder %v385_v18, 4  ;;  %v408_v57 = vsel %vm404_vm9, %v388_v41, %v391_v30  ;;  %v412_v58 = vsel %vm404_vm9, %v391_v30, %v394_v38 }
 0x164   :  { %vm406_vm12 = vcmp.lt.s32.totalorder %v385_v18, 3  ;;  %v409_v3 = vsel %vm407_vm11, %v397_v43, 2102212464  ;;  %v413_v4 = vsel %vm407_vm11, %v400_v54, 920167782  ;;  %v416_v20 = vsel %vm404_vm9, %v394_v38, %v397_v43 }
 0x165   :  { %v410_v23 = vsel %vm406_vm12, %v394_v38, %v409_v3  ;;  %v414_v27 = vsel %vm406_vm12, %v397_v43, %v413_v4  ;;  %v417_v29 = vsel %vm407_vm11, %v403_v55, 1326507024  ;;  %v1086_v53 = vshll.u32 %v1711_v19, %v1083_v26 }
 0x166   :  { %v411_v59 = vsel %vm405_vm10, %v408_v57, %v410_v23  ;;  %v415_v32 = vsel %vm405_vm10, %v412_v58, %v414_v27  ;;  %v418_v33 = vsel %vm406_vm12, %v400_v54, %v417_v29  ;;  %v1087_v39 = vshrl.u32 %v1712_v22, %v1084_v49 }
 0x167   :  { %v419_v30 = vsel %vm405_vm10, %v416_v20, %v418_v33  ;;  %v1909_v40 = vmul.u32.u64.low %v1877_v16, %v415_v32  ;;  %v1910_v41 = vmul.u32.u64.high %v1877_v16, %v415_v32, %v1909_v40  ;;  %v1085_v38 = vshrl.u32 %v1711_v19, %v1084_v49 }
 0x168   :  { %v1915_v43 = vmul.u32.u64.low %v1877_v16, %v419_v30  ;;  %v1916_v46 = vmul.u32.u64.high %v1877_v16, %v419_v30, %v1915_v43  ;;  %v427_v48 = vmul.u32 %v1877_v16, %v411_v59  ;;  %v1088_v55 = vor.u32 %v1087_v39, %v1086_v53 }
 0x169   :  { %v1089_v54 = vshll.u32 %v1712_v22, %v1083_v26  ;;  %v1090_v57 = vshrl.u32 %v1713_v28, %v1084_v49  ;;  %v1092_v18 = vshll.u32 %v1713_v28, %v1083_v26  ;;  %v1093_v58 = vshrl.u32 %v1709_v9, %v1084_v49 }
 0x16a   :  { %v1095_v3 = vshll.u32 %v1709_v9, %v1083_v26  ;;  %v1096_v4 = vshrl.u32 %v1710_v13, %v1084_v49  ;;  %v1098_v20 = vshll.u32 %v1710_v13, %v1083_v26  ;;  %v1099_v23 = vshrl.u32 %v1714_v47, %v1084_v49 }
 0x16b   :  { %v430_v27 = vadd.s32 1, %v1910_v41  ;;  %v1091_v16 = vor.u32 %v1090_v57, %v1089_v54  ;;  %v1094_v29 = vor.u32 %v1093_v58, %v1092_v18  ;;  %vm1101_vm14 = vcmp.lt.s32.totalorder %v1895_v37, 1 }
 0x16c   :  { %vm429_vm15 = vc.u32 %v1916_v46, %v1909_v40  ;;  %v1097_v53 = vor.u32 %v1096_v4, %v1095_v3  ;;  %v1100_v59 = vor.u32 %v1099_v23, %v1098_v20  ;;  %vm1102_vm0 = vcmp.lt.s32.totalorder %v1895_v37, 2 }
 0x16d   :  { %v431_v32 = vsel %vm429_vm15, %v430_v27, %v1910_v41  ;;  %vm1103_vm2 = vcmp.lt.s32.totalorder %v1895_v37, 3  ;;  %vm1104_vm3 = vcmp.lt.s32.totalorder %v1895_v37, 4  ;;  %v1105_v26 = vsel %vm1101_vm14, %v1085_v38, %v1088_v55 }
 0x16e   :  { %v432_v49 = vadd.s32 %v431_v32, %v427_v48  ;;  %v1106_v33 = vsel %vm1104_vm3, %v1094_v29, 2102212464  ;;  %v1109_v39 = vsel %vm1101_vm14, %v1088_v55, %v1091_v16  ;;  %v1110_v30 = vsel %vm1104_vm3, %v1097_v53, 920167782 }
 0x16f   :  { %v1107_v43 = vsel %vm1103_vm2, %v1091_v16, %v1106_v33  ;;  %v1111_v54 = vsel %vm1103_vm2, %v1094_v29, %v1110_v30  ;;  %v1113_v57 = vsel %vm1101_vm14, %v1091_v16, %v1094_v29  ;;  %v1114_v18 = vsel %vm1104_vm3, %v1100_v59, 1326507024 }
 0x170   :  { %v195_v58 = vshrl.u32 %v1714_v47, %v1852_v62  ;;  %v433_v3 = vadd.s32 536870912, %v432_v49  ;;  %v1112_v41 = vsel %vm1102_vm0, %v1109_v39, %v1111_v54  ;;  %v1115_v4 = vsel %vm1103_vm2, %v1097_v53, %v1114_v18 }
 0x171   :  { %v1942_v38 = vsel %vm873_vm13, %v1875_v12, 0  ;;  %v1116_v48 = vsel %vm1102_vm0, %v1113_v57, %v1115_v4  ;;  %v1947_v55 = vmul.u32.u64.low %v1893_v36, %v1112_v41  ;;  %v1948_v20 = vmul.u32.u64.high %v1893_v36, %v1112_v41, %v1947_v55 }
 0x172   :  { %v434_v23 = vshrl.u32 %v433_v3, 30  ;;  %v1108_v27 = vsel %vm1102_vm0, %v1105_v26, %v1107_v43  ;;  %v1954_v16 = vmul.u32.u64.low %v1893_v36, %v1116_v48  ;;  %v1955_v29 = vmul.u32.u64.high %v1893_v36, %v1116_v48, %v1954_v16 }
 0x173   :  { %v182_v12 = vshll.u32 %v1711_v19, %v1832_v51  ;;  %v183_v53 = vshrl.u32 %v1712_v22, %v1852_v62  ;;  %v185_v59 = vshll.u32 %v1712_v22, %v1832_v51  ;;  %v186_v32 = vshrl.u32 %v1713_v28, %v1852_v62 }
 0x174   :  { %v193_v37 = vor.u32 %v1887_v25, %v1873_v10  ;;  %v1968_v26 = vand.u32 31, %v1942_v38  ;;  %v435_v33 = vshll.u32 %v434_v23, 30  ;;  %v189_v39 = vshrl.u32 %v1709_v9, %v1852_v62 }
 0x175   :  { %v1127_v30 = vadd.s32 1, %v1948_v20  ;;  %v184_v43 = vor.u32 %v183_v53, %v182_v12  ;;  %v187_v54 = vor.u32 %v186_v32, %v185_v59  ;;  %v188_v57 = vshll.u32 %v1713_v28, %v1832_v51 }
 0x176   :  { %v196_v18 = vor.u32 %v195_v58, %v1881_v17  ;;  %v1976_v3 = vsub.s32 %v432_v49, %v435_v33  ;;  %v1124_v10 = vmul.u32 %v1893_v36, %v1108_v27  ;;  %vm1126_vm5 = vc.u32 %v1955_v29, %v1947_v55 }
 0x177   :  { %vm200_vm6 = vcmp.lt.s32.totalorder %v1869_v8, 4  ;;  %v1128_v25 = vsel %vm1126_vm5, %v1127_v30, %v1948_v20  ;;  %v190_v41 = vor.u32 %v189_v39, %v188_v57  ;;  %vm197_vm8 = vcmp.lt.s32.totalorder %v1869_v8, 1 }
 0x178   :  { %v206_v4 = vsel %vm200_vm6, %v193_v37, 920167782  ;;  %v438_v51 = vsub.s32 0, %v1976_v3  ;;  %v1129_v17 = vadd.s32 %v1128_v25, %v1124_v10  ;;  %v1989_v36 = vsub.s32 32, %v1968_v26 }
 0x179   :  { %v888_v49 = vshll.u32 %v1709_v9, %v1968_v26  ;;  %v205_v58 = vsel %vm197_vm8, %v184_v43, %v187_v54  ;;  %v213_v48 = vshll.u32 %v173_v6, 8  ;;  %v210_v20 = vsel %vm200_vm6, %v196_v18, 1326507024 }
 0x17a   :  { %v891_v27 = vshll.u32 %v1710_v13, %v1968_v26  ;;  %vm2003_vm9 = vcmp.le.f32.partialorder %v372_v35, 0.7853982  ;;  %v1526_v12 = vmin.u32 %v438_v51, %v1976_v3  ;;  %vm199_vm10 = vcmp.lt.s32.totalorder %v1869_v8, 3 }
 0x17b   :  { %v458_v53 = vsub.s32 4, %v434_v23  ;;  %v1130_v59 = vadd.s32 536870912, %v1129_v17  ;;  %vm198_vm11 = vcmp.lt.s32.totalorder %v1869_v8, 2  ;;  %v207_v56 = vsel %vm199_vm10, %v190_v41, %v206_v4 }
 0x17c   :  { %v440_v6 = vclz %v1526_v12  ;;  %v202_v32 = vsel %vm200_vm6, %v190_v41, 2102212464  ;;  %v208_v35 = vsel %vm198_vm11, %v205_v58, %v207_v56  ;;  %v209_v33 = vsel %vm197_vm8, %v187_v54, %v190_v41 }
 0x17d   :  { %v889_v39 = vshrl.u32 %v1710_v13, %v1989_v36  ;;  %v892_v30 = vshrl.u32 %v1714_v47, %v1989_v36  ;;  %v1131_v57 = vshrl.u32 %v1130_v59, 30  ;;  %v181_v18 = vshrl.u32 %v1711_v19, %v1852_v62 }
 0x17e   :  { %v1527_v10 = vadd.s32 4294967294, %v440_v6  ;;  %v211_v25 = vsel %vm199_vm10, %v193_v37, %v210_v20  ;;  %v2026_v4 = vmul.u32.u64.low %v213_v48, %v208_v35  ;;  %v2027_v51 = vmul.u32.u64.high %v213_v48, %v208_v35, %v2026_v4 }
 0x17f   :  { %v1132_v58 = vshll.u32 %v1131_v57, 30  ;;  %v201_v41 = vsel %vm197_vm8, %v181_v18, %v184_v43  ;;  %v203_v13 = vsel %vm199_vm10, %v187_v54, %v202_v32  ;;  %v212_v47 = vsel %vm198_vm11, %v209_v33, %v211_v25 }
 0x180   :  { %vm1528_vm12 = vcmp.lt.s32.totalorder %v1527_v10, 0  ;;  %v459_v62 = vsel %vm374_vm7, %v458_v53, %v434_v23  ;;  %v2038_v12 = vmul.u32.u64.low %v213_v48, %v212_v47  ;;  %v2039_v37 = vmul.u32.u64.high %v213_v48, %v212_v47, %v2038_v12  ;;  %v2053_v23 = vld [vmem:[%s2465_s2 + $0x4] sm:$0x7] }
 0x181   :  { %v2042_v20 = vshrl.u32 %v1942_v38, 5  ;;  %v2044_v59 = vor.u32 %v889_v39, %v888_v49  ;;  %v443_v56 = vsel %vm1528_vm12, 0, %v1527_v10  ;;  %v2046_v43 = vsub.s32 %v1129_v17, %v1132_v58 }
 0x182   :  { %v428_v54 = vadd.s32 %v1909_v40, %v1916_v46  ;;  %v444_v6 = vsub.s32 32, %v443_v56  ;;  %v448_v32 = vsub.s32 4294967266, %v443_v56  ;;  %v204_v53 = vsel %vm198_vm11, %v201_v41, %v203_v13 }
 0x183   :  { %v893_v38 = vor.u32 %v892_v30, %v891_v27  ;;  %v461_v49 = vsel %vm2003_vm9, 0, %v459_v62  ;;  %v1135_v17 = vsub.s32 0, %v2046_v43  ;;  %v223_v35 = vadd.s32 1, %v2027_v51 }
 0x184   :  { %v445_v40 = vshll.u32 %v1976_v3, %v443_v56  ;;  %v446_v46 = vshrl.u32 %v428_v54, %v444_v6  ;;  %v449_v33 = vadd.s32 127, %v448_v32  ;;  %vm222_vm13 = vc.u32 %v2039_v37, %v2026_v4 }
 0x185   :  { %vm1071_vm14 = vcmp.lt.s32.totalorder %v1817_v34, 0  ;;  %v1549_v8 = vmin.u32 %v1135_v17, %v2046_v43  ;;  %v2068_v27 = vrot.slane %v2053_v23, %v1824_v42  ;;  %v220_v39 = vmul.u32 %v213_v48, %v204_v53 }
 0x186   :  { %v447_v30 = vor.u32 %v446_v46, %v445_v40  ;;  %v450_v18 = vshll.u32 %v449_v33, 23  ;;  %v568_v10 = vadd.s32 3, %v461_v49  ;;  %v224_v25 = vsel %vm222_vm13, %v223_v35, %v2027_v51 }
 0x187   :  { %vm897_vm15 = vcmp.lt.s32.totalorder %v2042_v20, 4  ;;  %vm2074_vm0 = vcmp.le.f32.partialorder %v1069_v44, 0.7853982  ;;  %v1137_v58 = vclz %v1549_v8  ;;  %v1155_v41 = vsub.s32 4, %v1131_v57 }
 0x188   :  { %v225_v13 = vadd.s32 %v224_v25, %v220_v39  ;;  %v2081_v42 = vsel %vm897_vm15, %v2044_v59, 920167782  ;;  %v2085_v48 = vsel %vm897_vm15, %v893_v38, 1326507024  ;;  %v451_v51 = vor.u32 4788187, %v450_v18 }
 0x189   :  { %v2089_v47 = vrot.slane %v2053_v23, %v1830_v50  ;;  %v2091_v44 = vand.u32 3, %v461_v49  ;;  %v1125_v62 = vadd.s32 %v1947_v55, %v1955_v29  ;;  %v1550_v12 = vadd.s32 4294967294, %v1137_v58 }
 0x18a   :  { %v226_v56 = vadd.s32 536870912, %v225_v13  ;;  %v452_v54 = vand.u32 2147483647, %v451_v51  ;;  %v454_v6 = vcvt.s32.f32 %v447_v30  ;;  %v2095_v32 = vand.u32 3, %v568_v10 }
 0x18b   :  { %v862_v53 = vand.u32 2147483647, %v1814_v31  ;;  %vm1551_vm2 = vcmp.lt.s32.totalorder %v1550_v12, 0  ;;  %v1156_v38 = vsel %vm1071_vm14, %v1155_v41, %v1131_v57  ;;  %v885_v50 = vshll.u32 %v1713_v28, %v1968_v26 }
 0x18c   :  { %v227_v17 = vshrl.u32 %v226_v56, 30  ;;  %v455_v49 = vmul.f32 %v454_v6, %v452_v54  ;;  %v1140_v35 = vsel %vm1551_vm2, 0, %v1550_v12  ;;  %v879_v55 = vshll.u32 %v1711_v19, %v1968_v26 }
 0x18d   :  { %v886_v29 = vshrl.u32 %v1709_v9, %v1989_v36  ;;  %v1141_v40 = vsub.s32 32, %v1140_v35  ;;  %v1145_v46 = vsub.s32 4294967266, %v1140_v35  ;;  %vm167_vm3 = vcmp.lt.s32.totalorder %v1805_v21, 0 }
 0x18e   :  { %v228_v33 = vshll.u32 %v227_v17, 30  ;;  %v880_v57 = vshrl.u32 %v1712_v22, %v1989_v36  ;;  %v456_v8 = vxor.u32 2147483648, %v455_v49  ;;  %v1142_v39 = vshll.u32 %v2046_v43, %v1140_v35 }
 0x18f   :  { %v882_v30 = vshll.u32 %v1712_v22, %v1968_v26  ;;  %v883_v18 = vshrl.u32 %v1713_v28, %v1989_v36  ;;  %v1143_v10 = vshrl.u32 %v1125_v62, %v1141_v40  ;;  %v1146_v25 = vadd.s32 127, %v1145_v46 }
 0x190   :  { %v2114_v9 = vsub.s32 %v225_v13, %v228_v33  ;;  %v887_v58 = vor.u32 %v886_v29, %v885_v50  ;;  %v457_v41 = vsel %vm374_vm7, %v456_v8, %v455_v49  ;;  %v1158_v51 = vsel %vm2074_vm0, 0, %v1156_v38 }
 0x191   :  { %vm2122_vm5 = vcmp.le.f32.partialorder %v165_v45, 0.7853982  ;;  %v869_v22 = vand.u32 8388607, %v862_v53  ;;  %v878_v28 = vshrl.u32 %v1711_v19, %v1989_v36  ;;  %v460_v26 = vsel %vm2003_vm9, %v1808_v24, %v457_v41 }
 0x192   :  { %v1144_v13 = vor.u32 %v1143_v10, %v1142_v39  ;;  %v1147_v62 = vshll.u32 %v1146_v25, 23  ;;  %v231_v12 = vsub.s32 0, %v2114_v9  ;;  %1620 = vcosq.f32 %v460_v26 }
 0x193   :  { %v251_v56 = vsub.s32 4, %v227_v17  ;;  %v881_v45 = vor.u32 %v880_v57, %v879_v55  ;;  %v884_v54 = vor.u32 %v883_v18, %v882_v30  ;;  %1622 = vsinq.f32 %v460_v26 }
 0x194   :  { %v1148_v6 = vor.u32 4788187, %v1147_v62  ;;  %v1518_v38 = vmin.u32 %v231_v12, %v2114_v9  ;;  %v899_v50 = vsel %vm897_vm15, %v887_v58, 2102212464  ;;  %v2137_v19 = vand.u32 3, %v1158_v51 }
 0x195   :  { %v1265_v36 = vadd.s32 3, %v1158_v51  ;;  %v870_v16 = vor.u32 8388608, %v869_v22  ;;  %vm894_vm6 = vcmp.lt.s32.totalorder %v2042_v20, 1  ;;  %v1151_v35 = vcvt.s32.f32 %v1144_v13 }
 0x196   :  { %v1149_v49 = vand.u32 2147483647, %v1148_v6  ;;  %v233_v29 = vclz %v1518_v38  ;;  %vm896_vm7 = vcmp.lt.s32.totalorder %v2042_v20, 3  ;;  %vm470_vm8 = vcmp.eq.s32.totalorder %v2091_v44, 2 }
 0x197   :  { %vm574_vm9 = vcmp.eq.s32.totalorder %v2095_v32, 2  ;;  %v252_v55 = vsel %vm167_vm3, %v251_v56, %v227_v17  ;;  %v898_v40 = vsel %vm894_vm6, %v878_v28, %v881_v45  ;;  %v900_v46 = vsel %vm896_vm7, %v884_v54, %v899_v50 }
 0x198   :  { %v902_v33 = vsel %vm894_vm6, %v881_v45, %v884_v54  ;;  %vm467_vm10 = vcmp.eq.s32.totalorder %v2091_v44, 0  ;;  %vm571_vm11 = vcmp.eq.s32.totalorder %v2095_v32, 0  ;;  %v1152_v57 = vmul.f32 %v1151_v35, %v1149_v49 }
 0x199   :  { %v1519_v8 = vadd.s32 4294967294, %v233_v29  ;;  %v904_v39 = vsel %vm896_vm7, %v887_v58, %v2081_v42  ;;  %v906_v17 = vsel %vm894_vm6, %v884_v54, %v887_v58  ;;  %vm466_vm12 = vcmp.lt.s32.totalorder %v2091_v44, 2 }
 0x19a   :  { %vm570_vm13 = vcmp.lt.s32.totalorder %v2095_v32, 2  ;;  %v2160_v30 = vand.u32 3, %v1265_v36  ;;  %v221_v18 = vadd.s32 %v2026_v4, %v2039_v37  ;;  %vm895_vm15 = vcmp.lt.s32.totalorder %v2042_v20, 2 }
 0x19b   :  { %v908_v10 = vsel %vm896_vm7, %v2044_v59, %v2085_v48  ;;  %vm464_vm2 = vweird.f32 %v1808_v24  ;;  %v1153_v42 = vxor.u32 2147483648, %v1152_v57  ;;  %vm1520_vm6 = vcmp.lt.s32.totalorder %v1519_v8, 0  ;;  %v71_v24 = vld [vmem:[%s2466_s3] sm:$0xff] }
 0x19c   :  { %v2172_v25 = vsel %vm2122_vm5, 0, %v252_v55  ;;  %v909_v58 = vsel %vm895_vm15, %v906_v17, %v908_v10  ;;  %v236_v41 = vsel %vm1520_vm6, 0, %v1519_v8  ;;  %v2174_v51 = vsel %vm895_vm15, %v898_v40, %v900_v46  ;;  %v1621_v28 = vpop.eup %1620 }
 0x19d   :  { %v905_v4 = vsel %vm895_vm15, %v902_v33, %v904_v39  ;;  %v2176_v37 = vshll.u32 %v870_v16, 8  ;;  %v1154_v22 = vsel %vm1071_vm14, %v1153_v42, %v1152_v57  ;;  %v237_v20 = vsub.s32 32, %v236_v41  ;;  %v1623_v56 = vpop.eup %1622 }
 0x19e   :  { %v241_v59 = vsub.s32 4294967266, %v236_v41  ;;  %v2182_v48 = vrot.slane %v1837_v52, %v1791_v11  ;;  %v1157_v26 = vsel %vm2074_vm0, %v1817_v34, %v1154_v22  ;;  %v238_v13 = vshll.u32 %v2114_v9, %v236_v41  ;;  %v72_v41 = vld [vmem:[%s2467_s4] sm:$0xff] }
 0x19f   :  { %v2189_v62 = vmul.u32.u64.low %v2176_v37, %v909_v58  ;;  %v2190_v12 = vmul.u32.u64.high %v2176_v37, %v909_v58, %v2189_v62  ;;  %v471_v45 = vxor.u32 2147483648, %v1621_v28  ;;  %1624 = vcosq.f32 %v1157_v26 }
 0x1a0   :  { %v239_v54 = vshrl.u32 %v221_v18, %v237_v20  ;;  %v242_v6 = vadd.s32 127, %v241_v59  ;;  %v468_v38 = vxor.u32 2147483648, %v1623_v56  ;;  %1626 = vsinq.f32 %v1157_v26 }
 0x1a1   :  { %v2193_v52 = vmul.u32.u64.low %v2176_v37, %v905_v4  ;;  %v2194_v50 = vmul.u32.u64.high %v2176_v37, %v905_v4, %v2193_v52  ;;  %v472_v3 = vsel %vm470_vm8, %v471_v45, %v1623_v56  ;;  %v576_v9 = vsel %vm574_vm9, %v471_v45, %v1623_v56 }
 0x1a2   :  { %v240_v36 = vor.u32 %v239_v54, %v238_v13  ;;  %v243_v16 = vshll.u32 %v242_v6, 23  ;;  %v469_v49 = vsel %vm467_vm10, %v1621_v28, %v468_v38  ;;  %v573_v35 = vsel %vm571_vm11, %v1621_v28, %v468_v38 }
 0x1a3   :  { %v917_v29 = vmul.u32 %v2176_v37, %v2174_v51  ;;  %vm919_vm14 = vc.u32 %v2190_v12, %v2193_v52  ;;  %v473_v55 = vsel %vm466_vm12, %v469_v49, %v472_v3  ;;  %v577_v40 = vsel %vm570_vm13, %v573_v35, %v576_v9 }
 0x1a4   :  { %vm1167_vm0 = vcmp.eq.s32.totalorder %v2137_v19, 2  ;;  %vm1271_vm7 = vcmp.eq.s32.totalorder %v2160_v30, 2  ;;  %v244_v46 = vor.u32 4788187, %v243_v16  ;;  %v247_v33 = vcvt.s32.f32 %v240_v36 }
 0x1a5   :  { %v474_v57 = vsel %vm464_vm2, nan, %v473_v55  ;;  %v578_v8 = vsel %vm464_vm2, nan, %v577_v40  ;;  %vm1164_vm8 = vcmp.eq.s32.totalorder %v2137_v19, 0  ;;  %vm1268_vm9 = vcmp.eq.s32.totalorder %v2160_v30, 0 }
 0x1a6   :  { %v920_v44 = vadd.s32 1, %v2194_v50  ;;  %v2224_v32 = vrot.slane %v2053_v23, %v1791_v11  ;;  %v596_v39 = vmul.f32 %v1803_v15, %v578_v8  ;;  %v599_v17 = vmul.f32 %v1800_v14, %v578_v8 }
 0x1a7   :  { %v618_v18 = vmul.f32 %v1846_v60, %v474_v57  ;;  %v619_v10 = vmul.f32 %v1849_v61, %v578_v8  ;;  %vm1163_vm10 = vcmp.lt.s32.totalorder %v2137_v19, 2  ;;  %vm1267_vm11 = vcmp.lt.s32.totalorder %v2160_v30, 2 }
 0x1a8   :  { %v621_v42 = vmul.f32 %v1849_v61, %v474_v57  ;;  %v622_v11 = vmul.f32 %v1846_v60, %v578_v8  ;;  %v595_v23 = vmul.f32 %v1800_v14, %v474_v57  ;;  %v598_v58 = vmul.f32 %v1803_v15, %v474_v57 }
 0x1a9   :  { %vm1161_vm12 = vweird.f32 %v1817_v34  ;;  %v620_v51 = vadd.f32 %v619_v10, %v618_v18  ;;  %v641_v4 = vmul.f32 %v1859_v0, %v474_v57  ;;  %v642_v37 = vmul.f32 %v1862_v2, %v578_v8  ;;  %v1625_v13 = vpop.eup %1624  ;;  %v1536_v34 = vld [vmem:[%s2467_s4 + $0x8] sm:$0xff] }
 0x1aa   :  { %v644_v22 = vmul.f32 %v1862_v2, %v474_v57  ;;  %v623_v20 = vsub.f32 %v621_v42, %v622_v11  ;;  %v597_v59 = vadd.f32 %v596_v39, %v595_v23  ;;  %v600_v28 = vsub.f32 %v598_v58, %v599_v17  ;;  %v1627_v6 = vpop.eup %1626 }
 0x1ab   :  { %v645_v26 = vmul.f32 %v1859_v0, %v578_v8  ;;  %v624_v62 = vmul.f32 %v620_v51, %v71_v24  ;;  %v643_v56 = vadd.f32 %v642_v37, %v641_v4  ;;  %v245_v45 = vand.u32 2147483647, %v244_v46  ;;  %v1535_v51 = vld [vmem:[%s2466_s3 + $0x8] sm:$0xff] }
 0x1ac   :  { %v921_v54 = vsel %vm919_vm14, %v920_v44, %v2194_v50  ;;  %v625_v38 = vmul.f32 %v623_v20, %v72_v41  ;;  %v601_v3 = vmul.f32 %v597_v59, %v71_v24  ;;  %v602_v9 = vmul.f32 %v600_v28, %v72_v41 }
 0x1ad   :  { %v1168_v36 = vxor.u32 2147483648, %v1625_v13  ;;  %v1165_v16 = vxor.u32 2147483648, %v1627_v6  ;;  %v646_v49 = vsub.f32 %v644_v22, %v645_v26  ;;  %v647_v35 = vmul.f32 %v643_v56, %v71_v24 }
 0x1ae   :  { %v248_v55 = vmul.f32 %v247_v33, %v245_v45  ;;  %v626_v40 = vadd.f32 %v625_v38, %v624_v62  ;;  %v922_v8 = vadd.s32 %v921_v54, %v917_v29  ;;  %v2264_v24 = vadd.f32 %v602_v9, %v601_v3  ;;  %v2297_v3 = vld [vmem:[%s2463_s0] sm:$0x7] }
 0x1af   :  { %v1169_v57 = vsel %vm1167_vm0, %v1168_v36, %v1627_v6  ;;  %v1273_v46 = vsel %vm1271_vm7, %v1168_v36, %v1627_v6  ;;  %v1166_v50 = vsel %vm1164_vm8, %v1625_v13, %v1165_v16  ;;  %v1270_v44 = vsel %vm1268_vm9, %v1625_v13, %v1165_v16 }
 0x1b0   :  { %v648_v39 = vmul.f32 %v646_v49, %v72_v41  ;;  %v249_v17 = vxor.u32 2147483648, %v248_v55  ;;  %673 = vrot.lane.b32.xlu1 %v626_v40, %s1715_s19  ;;  %v1170_v33 = vsel %vm1163_vm10, %v1166_v50, %v1169_v57  ;;  %v1274_v18 = vsel %vm1267_vm11, %v1270_v44, %v1273_v46  ;;  %v2303_v49 = vld [vmem:[%s2463_s0 + $0x4] sm:$0x7]  ;;  %s1717_s0 = smov [#allocation6]  }
 0x1b1   :  { %v923_v10 = vadd.s32 536870912, %v922_v8  ;;  %v1171_v29 = vsel %vm1161_vm12, nan, %v1170_v33  ;;  %v1275_v42 = vsel %vm1161_vm12, nan, %v1274_v18  ;;  %v361_v46 = vadd.s32 3, %v2172_v25  ;;  %s1484_s27 = sshll.u32 %s1717_s0, 4  ;;  %s1485_s27 = int_to_ptr.vmem [resolvable:$true] %s1484_s27 }
 0x1b2   :  { %v649_v11 = vadd.f32 %v648_v39, %v647_v35  ;;  %v250_v23 = vsel %vm167_vm3, %v249_v17, %v248_v55  ;;  %v1317_v58 = vmul.f32 %v1856_v63, %v1171_v29  ;;  %v1318_v19 = vmul.f32 %v2068_v27, %v1275_v42  ;;  %s1636_s28 = scalar_lea.vmem %s1485_s27, 256  ;;  %p1641_p1 = scmp.lt.s32.totalorder %s1485_s27, %s1485_s27 }
 0x1b3   :  { %v1320_v30 = vmul.f32 %v2068_v27, %v1171_v29  ;;  %v1321_v41 = vmul.f32 %v1856_v63, %v1275_v42  ;;  %v1340_v4 = vmul.f32 %v1866_v5, %v1171_v29  ;;  %v1341_v37 = vmul.f32 %v2089_v47, %v1275_v42  ;;  %p1637_p0 = scmp.ne.s32.totalorder %s1485_s27, %s1636_s28  ;;  %p1642_p2 = scmp.lt.s32.totalorder %s1636_s28, %s1636_s28 }
 0x1b4   :  { %v1343_v22 = vmul.f32 %v2089_v47, %v1171_v29  ;;  %v1344_v20 = vmul.f32 %v1866_v5, %v1275_v42  ;;  %v1319_v59 = vadd.f32 %v1318_v19, %v1317_v58  ;;  %677 = vrot.lane.b32.xlu1 %v649_v11, %s1716_s24  ;;  %v253_v26 = vsel %vm2122_vm5, %v1805_v21, %v250_v23 }
 0x1b5   :  { %v1322_v28 = vsub.f32 %v1320_v30, %v1321_v41  ;;  %v2290_v13 = vshrl.u32 %v923_v10, 30  ;;  %v1342_v62 = vadd.f32 %v1341_v37, %v1340_v4  ;;  %1628 = vcosq.f32 %v253_v26  ;;  %p1643_p3 = por %p1642_p2, %p1641_p1 }
 0x1b6   :  { %v1345_v56 = vsub.f32 %v1343_v22, %v1344_v20  ;;  %v1295_v45 = vmul.f32 %v2224_v32, %v1275_v42  ;;  %v1323_v54 = vmul.f32 %v1535_v51, %v1319_v59  ;;  %1630 = vsinq.f32 %v253_v26 }
 0x1b7   :  { %v1324_v6 = vmul.f32 %v1536_v34, %v1322_v28  ;;  %v925_v38 = vshll.u32 %v2290_v13, 30  ;;  %v1346_v9 = vmul.f32 %v1535_v51, %v1342_v62  ;;  %v1298_v36 = vmul.f32 %v2182_v48, %v1275_v42  ;;  %p1644_p4 = pnand %p1643_p3, %p1637_p0 }
 0x1b8   :  { %v1347_v43 = vmul.f32 %v1536_v34, %v1345_v56  ;;  %v1294_v55 = vmul.f32 %v2182_v48, %v1171_v29  ;;  %v1297_v40 = vmul.f32 %v2224_v32, %v1171_v29  ;;  %v39_v50 = vrot.slane %v2297_v3, 1 }
 0x1b9   :  { %v1325_v16 = vadd.f32 %v1324_v6, %v1323_v54  ;;  %v926_v35 = vsub.s32 %v922_v8, %v925_v38  ;;  %v40_v33 = vrot.slane %v2303_v49, 1  ;;  %v258_v8 = vand.u32 3, %v2172_v25 }
 0x1ba   :  { %v1348_v57 = vadd.f32 %v1347_v43, %v1346_v9  ;;  %v1296_v39 = vadd.f32 %v1295_v45, %v1294_v55  ;;  %v1299_v17 = vsub.f32 %v1297_v40, %v1298_v36  ;;  %v362_v29 = vand.u32 3, %v361_v46 }
 0x1bb   :  { %1370 = vrot.lane.b32.xlu0 %v1325_v16, %s1715_s19  ;;  %v928_v44 = vsub.s32 0, %v926_v35  ;;  %v47_v11 = vrot.slane %v2297_v3, 2  ;;  %v48_v30 = vrot.slane %v2303_v49, 2  ;;  %vm259_vm3 = vcmp.lt.s32.totalorder %v258_v8, 2 }
 0x1bc   :  { %1374 = vrot.lane.b32.xlu1 %v1348_v57, %s1716_s24  ;;  %v1300_v10 = vmul.f32 %v1535_v51, %v1296_v39  ;;  %v1301_v42 = vmul.f32 %v1536_v34, %v1299_v17  ;;  %vm260_vm5 = vcmp.eq.s32.totalorder %v258_v8, 0  ;;  %vm263_vm13 = vcmp.eq.s32.totalorder %v258_v8, 2 }
 0x1bd   :  { %v1541_v18 = vmin.u32 %v928_v44, %v926_v35  ;;  %vm367_vm15 = vcmp.eq.s32.totalorder %v362_v29, 2  ;;  %vm364_vm2 = vcmp.eq.s32.totalorder %v362_v29, 0  ;;  %vm363_vm14 = vcmp.lt.s32.totalorder %v362_v29, 2 }
 0x1be   :  { %v2315_v58 = vadd.f32 %v1301_v42, %v1300_v10  ;;  %vm257_vm0 = vweird.f32 %v1805_v21  ;;  %v918_v54 = vadd.s32 %v2193_v52, %v2190_v12  ;;  %v948_v29 = vsub.s32 4, %v2290_v13 }
 0x1bf   :  { %41 = vrot.lane.b32.xlu0 %v39_v50, %s1715_s19  ;;  %v930_v23 = vclz %v1541_v18  ;;  %v1629_v19 = vpop.eup %1628  ;;  %vm864_vm7 = vcmp.lt.s32.totalorder %v1814_v31, 0  ;;  %vm863_vm8 = vcmp.le.f32.partialorder %v862_v53, 0.7853982 }
 0x1c0   :  { %43 = vrot.lane.b32.xlu1 %v40_v33, %s1715_s19  ;;  %v1631_v41 = vpop.eup %1630  ;;  %v264_v4 = vxor.u32 2147483648, %v1629_v19 }
 0x1c1   :  { %v1542_v25 = vadd.s32 4294967294, %v930_v23  ;;  %v261_v51 = vxor.u32 2147483648, %v1631_v41 }
 0x1c2   :  { %v265_v34 = vsel %vm263_vm13, %v264_v4, %v1631_v41  ;;  %v369_v37 = vsel %vm367_vm15, %v264_v4, %v1631_v41  ;;  %vm954_vm13 = vweird.f32 %v1814_v31  ;;  %vm55_vm15 = vcmask 138240  }
 0x1c3   :  { %49 = vrot.lane.b32.xlu0 %v47_v11, %s1716_s24  ;;  %vm1543_vm6 = vcmp.lt.s32.totalorder %v1542_v25, 0  ;;  %v262_v22 = vsel %vm260_vm5, %v1629_v19, %v261_v51  ;;  %v366_v20 = vsel %vm364_vm2, %v1629_v19, %v261_v51  ;;  %vm58_vm2 = vcmask 277504  }
 0x1c4   :  { %51 = vrot.lane.b32.xlu1 %v48_v30, %s1716_s24  ;;  %v933_v59 = vsel %vm1543_vm6, 0, %v1542_v25  ;;  %v266_v28 = vsel %vm259_vm3, %v262_v22, %v265_v34  ;;  %v370_v26 = vsel %vm363_vm14, %v366_v20, %v369_v37  ;;  %vm61_vm6 = vcmask 409600  }
 0x1c5   :  { %v934_v62 = vsub.s32 32, %v933_v59  ;;  %v267_v56 = vsel %vm257_vm0, nan, %v266_v28  ;;  %v371_v45 = vsel %vm257_vm0, nan, %v370_v26  ;;  %v938_v6 = vsub.s32 4294967266, %v933_v59 }
 0x1c6   :  { %v608_v38 = vmul.f32 %v1846_v60, %v267_v56  ;;  %v613_v9 = vmul.f32 %v1849_v61, %v371_v45  ;;  %v935_v43 = vshll.u32 %v926_v35, %v933_v59  ;;  %v2328_v55 = vmul.f32 %v1849_v61, %v267_v56 }
 0x1c7   :  { %v936_v36 = vshrl.u32 %v918_v54, %v934_v62  ;;  %v939_v16 = vadd.s32 127, %v938_v6  ;;  %v2331_v21 = vmul.f32 %v1846_v60, %v371_v45  ;;  %v631_v57 = vmul.f32 %v1859_v0, %v267_v56 }
 0x1c8   :  { %v614_v40 = vadd.f32 %v613_v9, %v608_v38  ;;  %v636_v46 = vmul.f32 %v1862_v2, %v371_v45  ;;  %v590_v35 = vmul.f32 %v1803_v15, %v371_v45  ;;  %v585_v61 = vmul.f32 %v1800_v14, %v267_v56 }
 0x1c9   :  { %v937_v12 = vor.u32 %v936_v36, %v935_v43  ;;  %v940_v52 = vshll.u32 %v939_v16, 23  ;;  %v617_v50 = vsub.f32 %v2328_v55, %v2331_v21  ;;  %v2341_v44 = vmul.f32 %v1803_v15, %v267_v56 }
 0x1ca   :  { %651 = vrot.lane.b32.xlu0 %v614_v40, %s1715_s19  ;;  %v2344_v60 = vmul.f32 %v1800_v14, %v371_v45  ;;  %v637_v17 = vadd.f32 %v636_v46, %v631_v57  ;;  %v2346_v33 = vadd.f32 %v590_v35, %v585_v61  ;;  %v949_v15 = vsel %vm864_vm7, %v948_v29, %v2290_v13 }
 0x1cb   :  { %v941_v39 = vor.u32 4788187, %v940_v52  ;;  %v944_v10 = vcvt.s32.f32 %v937_v12  ;;  %v951_v19 = vsel %vm863_vm8, 0, %v949_v15  ;;  %v638_v54 = vmul.f32 %v1862_v2, %v267_v56 }
 0x1cc   :  { %v594_v8 = vsub.f32 %v2341_v44, %v2344_v60  ;;  %v1058_v30 = vadd.s32 3, %v951_v19  ;;  %v955_v41 = vand.u32 3, %v951_v19  ;;  %v639_v6 = vmul.f32 %v1859_v0, %v371_v45 }
 0x1cd   :  { %v942_v18 = vand.u32 2147483647, %v941_v39 }
 0x1ce   :  { %655 = vrot.lane.b32.xlu0 %v637_v17, %s1716_s24  ;;  %v1059_v4 = vand.u32 3, %v1058_v30  ;;  %vm960_vm9 = vcmp.eq.s32.totalorder %v955_v41, 2  ;;  %vm957_vm11 = vcmp.eq.s32.totalorder %v955_v41, 0  ;;  %vm956_vm3 = vcmp.lt.s32.totalorder %v955_v41, 2 }
 0x1cf   :  { %v945_v42 = vmul.f32 %v944_v10, %v942_v18 }
 0x1d0   :  { %vm1064_vm10 = vcmp.eq.s32.totalorder %v1059_v4, 2  ;;  %vm1061_vm12 = vcmp.eq.s32.totalorder %v1059_v4, 0  ;;  %vm1060_vm5 = vcmp.lt.s32.totalorder %v1059_v4, 2 }
 0x1d1   :  { %v946_v11 = vxor.u32 2147483648, %v945_v42 }
 0x1d3   :  { %v947_v14 = vsel %vm864_vm7, %v946_v11, %v945_v42 }
 0x1d4   :  { %v950_v23 = vsel %vm863_vm8, %v1814_v31, %v947_v14 }
 0x1d5   :  { %1632 = vcosq.f32 %v950_v23 }
 0x1d6   :  { %1634 = vsinq.f32 %v950_v23 }
 0x1df   :  { %v1633_v25 = vpop.eup %1632 }
 0x1e0   :  { %v1635_v51 = vpop.eup %1634  ;;  %v961_v34 = vxor.u32 2147483648, %v1633_v25 }
 0x1e1   :  { %v958_v37 = vxor.u32 2147483648, %v1635_v51 }
 0x1e2   :  { %v962_v22 = vsel %vm960_vm9, %v961_v34, %v1635_v51  ;;  %v1066_v53 = vsel %vm1064_vm10, %v961_v34, %v1635_v51 }
 0x1e3   :  { %v959_v13 = vsel %vm957_vm11, %v1633_v25, %v958_v37  ;;  %v1063_v20 = vsel %vm1061_vm12, %v1633_v25, %v958_v37 }
 0x1e4   :  { %v963_v59 = vsel %vm956_vm3, %v959_v13, %v962_v22  ;;  %v1067_v28 = vsel %vm1060_vm5, %v1063_v20, %v1066_v53 }
 0x1e5   :  { %v964_v26 = vsel %vm954_vm13, nan, %v963_v59  ;;  %v1068_v62 = vsel %vm954_vm13, nan, %v1067_v28 }
 0x1e6   :  { %v1307_v38 = vmul.f32 %v1856_v63, %v964_v26  ;;  %v1312_v9 = vmul.f32 %v2068_v27, %v1068_v62  ;;  %v1330_v43 = vmul.f32 %v1866_v5, %v964_v26  ;;  %v1335_v36 = vmul.f32 %v2089_v47, %v1068_v62 }
 0x1e7   :  { %v1314_v16 = vmul.f32 %v2068_v27, %v964_v26  ;;  %v1315_v31 = vmul.f32 %v1856_v63, %v1068_v62  ;;  %v1337_v40 = vmul.f32 %v2089_v47, %v964_v26  ;;  %v1338_v57 = vmul.f32 %v1866_v5, %v1068_v62 }
 0x1e8   :  { %v1313_v46 = vadd.f32 %v1312_v9, %v1307_v38  ;;  %v1336_v2 = vadd.f32 %v1335_v36, %v1330_v43  ;;  %v1284_v0 = vmul.f32 %v2182_v48, %v964_v26  ;;  %v1289_v56 = vmul.f32 %v2224_v32, %v1068_v62 }
 0x1e9   :  { %v1316_v45 = vsub.f32 %v1314_v16, %v1315_v31  ;;  %v1339_v12 = vsub.f32 %v1337_v40, %v1338_v57  ;;  %v1291_v52 = vmul.f32 %v2224_v32, %v964_v26  ;;  %v1292_v35 = vmul.f32 %v2182_v48, %v1068_v62 }
 0x1ea   :  { %1350 = vrot.lane.b32.xlu1 %v1313_v46, %s1715_s19  ;;  %1354 = vrot.lane.b32.xlu0 %v1336_v2, %s1716_s24  ;;  %v1290_v63 = vadd.f32 %v1289_v56, %v1284_v0  ;;  %v640_v47 = vsub.f32 %v638_v54, %v639_v6 }
 0x1eb   :  { %v1293_v27 = vsub.f32 %v1291_v52, %v1292_v35 }
 0x1ee   :  { %663 = vrot.lane.b32.xlu1 %v617_v50, %s1715_s19  ;;  %667 = vrot.lane.b32.xlu0 %v640_v47, %s1716_s24 }
 0x1f2   :  { %1360 = vrot.lane.b32.xlu1 %v1316_v45, %s1715_s19 }
 0x1f6   :  { %1364 = vrot.lane.b32.xlu1 %v1339_v12, %s1716_s24 }
 0x222   :  { %v674_v5 = vpop.permute.xlu1 %673 }
 0x223   :  { %v680_v48 = vsel %vm55_vm15, %v2264_v24, %v674_v5 }
 0x226   :  { %v678_v32 = vpop.permute.xlu1 %677 }
 0x227   :  { %v681_v61 = vsel %vm58_vm2, %v680_v48, %v678_v32 }
 0x228   :  { %1574 = vmatpush3.msra.mxu1 %v681_v61 }
 0x229   :  { %1576 = vmatmul.mubr.msk.f32.vlgmr.msra.gmra.mrb[0].mxu1 %vm81_vm4, %v1782_v7  ;;  %1583 = vmatprep.subr.mxu1 %v1707_v1 }
 0x22a   :  { %1585 = vmatprep.mubr.msk.f32.mxu1 %vm1708_vm1, %v1707_v1  ;;  %vm761_vm1 = vcmask 416768  }
 0x22d   :  { %v1371_v55 = vpop.permute.xlu0 %1370 }
 0x22e   :  { %v1377_v21 = vsel %vm55_vm15, %v2315_v58, %v1371_v55  ;;  %v1375_v50 = vpop.permute.xlu1 %1374 }
 0x22f   :  { %v1378_v39 = vsel %vm58_vm2, %v1377_v21, %v1375_v50 }
 0x230   :  { %1584 = vmatpush3.msra.mxu1 %v1378_v39 }
 0x231   :  { %v42_v24 = vpop.permute.xlu0 %41  ;;  %1586 = vmatmul.mubr.msk.f32.vlgmr.msra.gmra.mrb[2].mxu1 %vm81_vm4, %v1782_v7 }
 0x232   :  { %v44_v17 = vpop.permute.xlu1 %43  ;;  %v56_v18 = vsel %vm55_vm15, %v2297_v3, %v42_v24 }
 0x233   :  { %v57_v1 = vsel %vm55_vm15, %v2303_v49, %v44_v17 }
 0x235   :  { %v50_v10 = vpop.permute.xlu0 %49 }
 0x236   :  { %v59_v42 = vsel %vm58_vm2, %v56_v18, %v50_v10  ;;  %v52_v58 = vpop.permute.xlu1 %51 }
 0x237   :  { %62 = vst.msk [vmem:[#allocation3] sm:$0x1] %vm61_vm6, %v59_v42  ;;  %v60_v29 = vsel %vm58_vm2, %v57_v1, %v52_v58 }
 0x238   :  { %63 = vst.msk [vmem:[#allocation3 + $0x1] sm:$0x1] %vm61_vm6, %v60_v29 }
 0x23c   :  { %v652_v11 = vpop.permute.xlu0 %651 }
 0x23d   :  { %v659_v7 = vsel %vm55_vm15, %v2346_v33, %v652_v11 }
 0x240   :  { %v656_v14 = vpop.permute.xlu0 %655 }
 0x241   :  { %v661_v3 = vsel %vm58_vm2, %v659_v7, %v656_v14 }
 0x242   :  { %763 = vst.msk [vmem:[#allocation6] sm:$0xff] %vm761_vm1, %v661_v3 }
 0x25c   :  { %v1351_v15 = vpop.permute.xlu1 %1350  ;;  %v1355_v49 = vpop.permute.xlu0 %1354 }
 0x25d   :  { %v1357_v23 = vsel %vm55_vm15, %v1290_v63, %v1351_v15 }
 0x25e   :  { %v1358_v19 = vsel %vm58_vm2, %v1357_v23, %v1355_v49 }
 0x25f   :  { %1462 = vst.msk [vmem:[#allocation6 + $0x8] sm:$0xff] %vm761_vm1, %v1358_v19 }
 0x260   :  { %v664_v30 = vpop.permute.xlu1 %663  ;;  %v668_v41 = vpop.permute.xlu0 %667 }
 0x261   :  { %v670_v33 = vsel %vm55_vm15, %v594_v8, %v664_v30 }
 0x262   :  { %v671_v4 = vsel %vm58_vm2, %v670_v33, %v668_v41 }
 0x263   :  { %764 = vst.msk [vmem:[#allocation8] sm:$0xff] %vm761_vm1, %v671_v4 }
 0x264   :  { %v1361_v25 = vpop.permute.xlu1 %1360 }
 0x265   :  { %v1367_v51 = vsel %vm55_vm15, %v1293_v27, %v1361_v25 }
 0x268   :  { %v1365_v34 = vpop.permute.xlu1 %1364 }
 0x269   :  { %v1368_v37 = vsel %vm58_vm2, %v1367_v51, %v1365_v34 }
 0x26a   :  { %1464 = vst.msk [vmem:[#allocation8 + $0x8] sm:$0xff] %vm761_vm1, %v1368_v37 }
 0x26b   :  { %1647 = shalt.err (!%p1644_p4)
}
 0x26c   :  { %s1648_s9 = scalar_lea.hbm %s2470_s7, 256 }
 0x26d   :  { %p1649_p5 = scmp.ne.s32.totalorder %s2470_s7, %s1648_s9  ;;  %p1652_p6 = scmp.lt.u32.totalorder %s1648_s9, %s2470_s7 }
 0x26f   :  { %p1654_p7 = pnand %p1652_p6, %p1649_p5 }
 0x271   :  { %1657 = shalt.err (!%p1654_p7)
}
 0x272   :  { %s1718_s13 = smov 128   ;;  %s1719_s14 = smov 8  }
 0x273   :  { %1490 = dma.vmem_to_hbm [thread:$0]  %s1485_s27, 256, %s2470_s7, [#allocation7], %s1718_s13, %s1718_s13, %s1719_s14  }
 0x274   :  { %s1720_s2 = smov [#allocation8]  }
 0x275   :  { %s1496_s16 = sshll.u32 %s1720_s2, 4  ;;  %s1497_s16 = int_to_ptr.vmem [resolvable:$true] %s1496_s16 }
 0x276   :  { %s1658_s17 = scalar_lea.vmem %s1497_s16, 256  ;;  %p1663_p9 = scmp.lt.s32.totalorder %s1497_s16, %s1497_s16 }
 0x277   :  { %p1659_p8 = scmp.ne.s32.totalorder %s1497_s16, %s1658_s17  ;;  %p1664_p10 = scmp.lt.s32.totalorder %s1658_s17, %s1658_s17 }
 0x279   :  { %p1665_p11 = por %p1664_p10, %p1663_p9 }
 0x27b   :  { %p1666_p12 = pnand %p1665_p11, %p1659_p8 }
 0x27d   :  { %1669 = shalt.err (!%p1666_p12)
}
 0x27e   :  { %s1670_s20 = scalar_lea.hbm %s2471_s8, 256 }
 0x27f   :  { %p1671_p13 = scmp.ne.s32.totalorder %s2471_s8, %s1670_s20  ;;  %p1674_p0 = scmp.lt.u32.totalorder %s1670_s20, %s2471_s8 }
 0x281   :  { %p1676_p1 = pnand %p1674_p0, %p1671_p13 }
 0x283   :  { %1679 = shalt.err (!%p1676_p1)
}
 0x284   :  { %1502 = dma.vmem_to_hbm [thread:$0]  %s1497_s16, 256, %s2471_s8, [#allocation7], %s1718_s13, %s1718_s13, %s1719_s14   ;;  %v1534_v22 = vld [vmem:[#allocation3] ss:$0 sm:$0xff]  ;;  %vm767_vm4 = vcmask 416775  }
 0x285   :  { %s1721_s4 = smov [#allocation4]   ;;  %v1559_v28 = vld [vmem:[#allocation3 + $0x1] ss:$0 sm:$0xff] }
 0x286   :  { %s1472_s25 = sshll.u32 %s1721_s4, 4  ;;  %s1473_s25 = int_to_ptr.vmem [resolvable:$true] %s1472_s25 }
 0x287   :  { %s1680_s8 = scalar_lea.vmem %s1473_s25, 256  ;;  %p1685_p3 = scmp.lt.s32.totalorder %s1473_s25, %s1473_s25 }
 0x288   :  { %p1681_p2 = scmp.ne.s32.totalorder %s1473_s25, %s1680_s8  ;;  %p1686_p4 = scmp.lt.s32.totalorder %s1680_s8, %s1680_s8 }
 0x28a   :  { %p1687_p5 = por %p1686_p4, %p1685_p3 }
 0x28c   :  { %p1688_p6 = pnand %p1687_p5, %p1681_p2 }
 0x2fc   :  { %v749_v44 = vpop.f32.mrb[0].mxu1 }
 0x2fd   :  { %v753_v60 = vmul.f32 0.01, %v749_v44  ;;  %v1577_v8 = vpop.f32.mrb[1].mxu1 }
 0x2ff   :  { %v760_v53 = vadd.f32 %v1534_v22, %v753_v60 }
 0x301   :  { %762 = vst.msk [vmem:[#allocation4] sm:$0xff] %vm761_vm1, %v760_v53 }
 0x302   :  { %768 = vst.msk [vmem:[#allocation3 - $0x7] sm:$0x80] %vm767_vm4, %v760_v53 }
 0x304   :  { %v1447_v13 = vpop.f32.mrb[2].mxu1 }
 0x305   :  { %v1451_v20 = vmul.f32 0.01, %v1447_v13  ;;  %v1587_v59 = vpop.f32.mrb[3].mxu1 }
 0x307   :  { %v1458_v26 = vadd.f32 %v1559_v28, %v1451_v20 }
 0x309   :  { %1460 = vst.msk [vmem:[#allocation4 + $0x8] sm:$0xff] %vm761_vm1, %v1458_v26 }
 0x30a   :  { %1466 = vst.msk [vmem:[#allocation3 - $0x6] sm:$0x80] %vm767_vm4, %v1458_v26 }
 0x30b   :  { %1691 = shalt.err (!%p1688_p6)
}
 0x30c   :  { %s1692_s27 = scalar_lea.hbm %s2469_s6, 256 }
 0x30d   :  { %p1693_p7 = scmp.ne.s32.totalorder %s2469_s6, %s1692_s27  ;;  %p1696_p8 = scmp.lt.u32.totalorder %s1692_s27, %s2469_s6 }
 0x30f   :  { %p1698_p9 = pnand %p1696_p8, %p1693_p7 }
 0x311   :  { %1701 = shalt.err (!%p1698_p9)
}
 0x312   :  { %1478 = dma.vmem_to_hbm [thread:$0]  %s1473_s25, 256, %s2469_s6, [#allocation5], %s1718_s13, %s1718_s13, %s1719_s14  }
 0x313   :  { %1702 = dma.done.wait [#allocation5], 256  }
 0x314   :  { %1703 = vsyncadd [#allocation5], 4294967040 }
 0x315   :  { %1704 = dma.done.wait [#allocation7], 512  }
 0x316   :  { %1705 = vsyncadd [#allocation7], 4294966784 }
 0x317   :  { %1512 = vsyncpa [#allocation5], 1 }
 0x318   :  { %1513 = vsyncpa [#allocation7], 1 }

</bundles_post_ra>
